<compile_context>
chip_gen: v7x
topology: tpu7x:2x2x1
jax: 0.10.0
libtpu: 0.0.40
codegen_flags: <defaults>
</compile_context>

<pallas_src>
import numpy as np
import jax
import jax.numpy as jnp
from jax import lax
from jax.experimental import pallas as pl
from jax.experimental.pallas import tpu as pltpu

EMB = 32                    # emb_size
NEG_SLOPE = 0.2             # LeakyReLU slope
BN_EPS = 1e-5               # BatchNorm2d default eps
KH2, KW2, SW2 = 14, 5, 5    # second conv kernel height/width and width-stride
K_IM2COL = 2 * KH2 * KW2    # 140 contraction elements per patch
KPAD = 256                  # K padded to a multiple of 256 (MXU cadence)
NPAD = 128                  # EMB padded to a lane-dense 128-wide output


def _fused_patch_embed_kernel(w1_ref, b1_ref, gamma_ref, beta_ref,
                              x_ref, w2_ref, b2_ref, o_ref, p_scr):
    """conv1(1->2,(1,3)) + BatchNorm2d(train) + LeakyReLU(0.2) + im2col MXU matmul.

    x_ref  : (B, H, W)     f32 VMEM input
    w2_ref : (KPAD, NPAD)  bf16 VMEM  im2col conv2 weight, rows ordered (c,kh,kw)
    b2_ref : (1, NPAD)     f32 VMEM   conv2 bias (added in f32 post-matmul)
    o_ref  : (MPAD, NPAD)  f32 VMEM   output, rows ordered (ho, wo, b)
    p_scr  : (MPAD, KPAD)  f32 VMEM   im2col operand scratch
    w1 (2,3) / b1 (2,) / gamma (2,) / beta (2,) : scalar tables in SMEM
    """
    B, H, W = x_ref.shape
    Wc = W - 2
    hout = H - KH2 + 1
    wout = (Wc - KW2) // SW2 + 1
    MPAD, KP = p_scr.shape
    K = K_IM2COL
    inv_n = 1.0 / float(B * H * Wc)

    # Zero only the padded K tail: columns [0,K) of the valid rows are fully
    # overwritten below, and the padded rows feed only output rows the wrapper
    # drops; the tail must be zero so stale-VMEM NaNs can't ride through the
    # (zero) padded weight rows.
    p_scr[:, K:KP] = jnp.zeros((MPAD, KP - K), jnp.float32)

    # Hoist the three shifted input slices out of the channel loop (3 loads).
    # TODO(synk): pltpu.roll (XLU) + a lane mask for the BN sums would avoid the
    # two misaligned slice relayouts; kept as slices for lowering safety.
    x0 = x_ref[:, :, 0:Wc]
    x1 = x_ref[:, :, 1:1 + Wc]
    x2 = x_ref[:, :, 2:2 + Wc]

    for c in range(2):
        # Conv2d(1,2,(1,3)) as a shifted-slice MAC on the VPU.
        acc = (w1_ref[c, 0] * x0 + w1_ref[c, 1] * x1 + w1_ref[c, 2] * x2
               + b1_ref[c])
        # BatchNorm2d training statistics: two-pass (mean, centered sum-of-squares).
        mean = jnp.sum(acc) * inv_n
        cen = acc - mean
        var = jnp.sum(cen * cen) * inv_n
        scale = lax.rsqrt(var + BN_EPS) * gamma_ref[c]
        z = cen * scale + beta_ref[c]
        # LeakyReLU(0.2) as a single VPU max.
        z = jnp.maximum(z, NEG_SLOPE * z)

        # im2col gather of non-overlapping (14,5)-stride-5 patches:
        #   row m = (ho*wout + wo)*B + b ,  col = (c*14 + kh)*5 + kw.
        for kh in range(KH2):
            col = (c * KH2 + kh) * KW2
            for ho in range(hout):
                zrow = z[:, ho + kh, :]                         # (B, Wc)
                for wo in range(wout):
                    row = (ho * wout + wo) * B
                    p_scr[row:row + B, col:col + KW2] = (
                        zrow[:, wo * SW2: wo * SW2 + KW2])

    # Projection on the MXU: bf16 operands, f32 accumulation, f32 bias add.
    o_ref[...] = (
        jnp.dot(p_scr[...].astype(jnp.bfloat16), w2_ref[...],
                preferred_element_type=jnp.float32)
        + b2_ref[...])


def prepare_params(params):
    """Parameter-only preprocessing. Build ONCE (outside the jitted forward).

    w2mat[(c*14+kh)*5+kw, e] = w2[e, c, kh, kw], zero-padded to (KPAD, NPAD) bf16.
    b2row = conv2 bias zero-padded to (1, NPAD) f32 (added in f32 in the kernel).
    """
    w2 = params["w2"]                                          # (EMB, 2, 14, 5)
    e = w2.shape[0]
    w2mat = jnp.transpose(w2, (1, 2, 3, 0)).reshape(K_IM2COL, e)
    w2mat = jnp.pad(w2mat, ((0, KPAD - K_IM2COL), (0, NPAD - e))).astype(jnp.bfloat16)
    b2row = jnp.pad(params["b2"].astype(jnp.float32), (0, NPAD - e)).reshape(1, NPAD)
    return dict(params, w2mat=w2mat, b2row=b2row)


def patch_embedding_forward(x, prepped):
    b, cin, h, w = x.shape
    assert cin == 1 and h >= KH2 and (w - 2) >= KW2
    wc = w - 2
    hout = h - KH2 + 1
    wout = (wc - KW2) // SW2 + 1
    m = b * hout * wout
    mpad = ((m + 7) // 8) * 8

    x3 = x[:, 0, :, :].astype(jnp.float32)                     # (B, H, W)

    out = pl.pallas_call(
        _fused_patch_embed_kernel,
        out_shape=jax.ShapeDtypeStruct((mpad, NPAD), jnp.float32),
        in_specs=[
            pl.BlockSpec(memory_space=pltpu.MemorySpace.SMEM),   # w1 (2,3)
            pl.BlockSpec(memory_space=pltpu.MemorySpace.SMEM),   # b1 (2,)
            pl.BlockSpec(memory_space=pltpu.MemorySpace.SMEM),   # gamma (2,)
            pl.BlockSpec(memory_space=pltpu.MemorySpace.SMEM),   # beta (2,)
            pl.BlockSpec(memory_space=pltpu.MemorySpace.VMEM),   # x (B,H,W) f32
            pl.BlockSpec(memory_space=pltpu.MemorySpace.VMEM),   # w2mat (KPAD,NPAD) bf16
            pl.BlockSpec(memory_space=pltpu.MemorySpace.VMEM),   # b2row (1,NPAD) f32
        ],
        out_specs=pl.BlockSpec(memory_space=pltpu.MemorySpace.VMEM),
        scratch_shapes=[pltpu.VMEM((mpad, KPAD), jnp.float32)],
    )(prepped["w1"], prepped["b1"], prepped["gamma"], prepped["beta"],
      x3, prepped["w2mat"], prepped["b2row"])

    # Kernel rows are ordered (ho, wo, b); rearrange to 'b (h w) e' and drop the
    # sublane/lane padding (tiny XLA transpose, outside the kernel).
    out = out[:m, :EMB].reshape(hout, wout, b, EMB)
    return jnp.transpose(out, (2, 0, 1, 3)).reshape(b, hout * wout, EMB)


def reference_forward(x, params):
    """Pure-JAX reference (lax.conv) for correctness check."""
    w1 = params["w1"].reshape(2, 1, 1, 3)
    y = lax.conv_general_dilated(
        x, w1, (1, 1), "VALID", dimension_numbers=("NCHW", "OIHW", "NCHW"))
    y = y + params["b1"].reshape(1, 2, 1, 1)
    mean = jnp.mean(y, axis=(0, 2, 3), keepdims=True)
    var = jnp.var(y, axis=(0, 2, 3), keepdims=True)          # biased, BN training mode
    y = (y - mean) / jnp.sqrt(var + BN_EPS)
    y = y * params["gamma"].reshape(1, 2, 1, 1) + params["beta"].reshape(1, 2, 1, 1)
    y = jnp.where(y >= 0, y, NEG_SLOPE * y)
    z = lax.conv_general_dilated(
        y, params["w2"], (1, SW2), "VALID", dimension_numbers=("NCHW", "OIHW", "NCHW"))
    z = z + params["b2"].reshape(1, EMB, 1, 1)
    bb, e, hh, ww = z.shape
    return jnp.transpose(z, (0, 2, 3, 1)).reshape(bb, hh * ww, e)


if __name__ == "__main__":
    key = jax.random.PRNGKey(0)
    k1, k2, k3, k4, k5, kx = jax.random.split(key, 6)

    params = {
        # Conv2d(1, 2, (1,3)) weight squeezed to (out_ch=2, kw=3); bias (2,)
        "w1": jax.random.normal(k1, (2, 3), jnp.float32) * 0.5,
        "b1": jax.random.normal(k2, (2,), jnp.float32) * 0.1,
        # BatchNorm2d(2) affine params (default init: gamma=1, beta=0)
        "gamma": jnp.ones((2,), jnp.float32),
        "beta": jnp.zeros((2,), jnp.float32),
        # Conv2d(2, EMB, (14,5)) weight/bias
        "w2": jax.random.normal(k3, (EMB, 2, 14, 5), jnp.float32) * 0.1,
        "b2": jax.random.normal(k4, (EMB,), jnp.float32) * 0.1,
        # cls_token exists in __init__ but is unused by forward (dead code in ref).
        "cls_token": jax.random.normal(k5, (1, 1, EMB), jnp.float32),
    }

    # x: (B=2, C=1, H=14, W=17) -> output (2, 1*3, 32)
    x = jax.random.normal(kx, (2, 1, 14, 17), jnp.float32)

    # Parameter preprocessing built once (not per forward call).
    prepped = prepare_params(params)

    fwd = jax.jit(patch_embedding_forward)
    out = jax.block_until_ready(fwd(x, prepped))

    ref = reference_forward(x, params)
    # Tolerance sized for the bf16 MXU operand path (f32 accumulation, f32 bias).
    np.testing.assert_allclose(np.asarray(out), np.asarray(ref), rtol=2e-2, atol=2e-2)
    assert out.shape == (2, 3, EMB)

    print("KERNEL_OK")
</pallas_src>

<mosaic_0001>
module attributes {stable_mosaic.version = 11 : i64} {
  func.func @_fused_patch_embed_kernel(%arg0: memref<2x3xf32, #tpu.memory_space<smem>>, %arg1: memref<2xf32, #tpu.memory_space<smem>>, %arg2: memref<2xf32, #tpu.memory_space<smem>>, %arg3: memref<2xf32, #tpu.memory_space<smem>>, %arg4: memref<2x14x17xf32, #tpu.memory_space<vmem>>, %arg5: memref<256x128xbf16, #tpu.memory_space<vmem>>, %arg6: memref<1x128xf32, #tpu.memory_space<vmem>>, %arg7: memref<8x128xf32, #tpu.memory_space<vmem>>, %arg8: memref<8x256xf32, #tpu.memory_space<vmem>>) attributes {dimension_semantics = [], scalar_prefetch = 0 : i64, scratch_operands = 1 : i64, tpu.core_type = #tpu.core_type<tc>} {
    %cst = arith.constant 0.000000e+00 : f32
    %0 = vector.broadcast %cst : f32 to vector<8x116xf32>
    %c0 = arith.constant 0 : index
    %c140 = arith.constant 140 : index
    %1 = vector.load %arg8[%c0, %c140] : memref<8x256xf32, #tpu.memory_space<vmem>>, vector<8x116xf32>
    tpu.vector_store %arg8[%c0, %c140], %0 {strides = array<i32>} : memref<8x256xf32, #tpu.memory_space<vmem>>, vector<8x116xf32>,
    %c0_0 = arith.constant 0 : index
    %c0_1 = arith.constant 0 : index
    %c0_2 = arith.constant 0 : index
    %2 = vector.load %arg4[%c0_0, %c0_1, %c0_2] : memref<2x14x17xf32, #tpu.memory_space<vmem>>, vector<2x14x15xf32>
    %c0_3 = arith.constant 0 : index
    %c0_4 = arith.constant 0 : index
    %c1 = arith.constant 1 : index
    %3 = vector.load %arg4[%c0_3, %c0_4, %c1] : memref<2x14x17xf32, #tpu.memory_space<vmem>>, vector<2x14x15xf32>
    %c0_5 = arith.constant 0 : index
    %c0_6 = arith.constant 0 : index
    %c2 = arith.constant 2 : index
    %4 = vector.load %arg4[%c0_5, %c0_6, %c2] : memref<2x14x17xf32, #tpu.memory_space<vmem>>, vector<2x14x15xf32>
    %c0_7 = arith.constant 0 : index
    %c0_8 = arith.constant 0 : index
    %5 = memref.load %arg0[%c0_7, %c0_8] : memref<2x3xf32, #tpu.memory_space<smem>>
    %6 = vector.broadcast %5 : f32 to vector<2x14x15xf32>
    %7 = arith.mulf %6, %2 : vector<2x14x15xf32>
    %c0_9 = arith.constant 0 : index
    %c1_10 = arith.constant 1 : index
    %8 = memref.load %arg0[%c0_9, %c1_10] : memref<2x3xf32, #tpu.memory_space<smem>>
    %9 = vector.broadcast %8 : f32 to vector<2x14x15xf32>
    %10 = arith.mulf %9, %3 : vector<2x14x15xf32>
    %11 = arith.addf %7, %10 : vector<2x14x15xf32>
    %c0_11 = arith.constant 0 : index
    %c2_12 = arith.constant 2 : index
    %12 = memref.load %arg0[%c0_11, %c2_12] : memref<2x3xf32, #tpu.memory_space<smem>>
    %13 = vector.broadcast %12 : f32 to vector<2x14x15xf32>
    %14 = arith.mulf %13, %4 : vector<2x14x15xf32>
    %15 = arith.addf %11, %14 : vector<2x14x15xf32>
    %c0_13 = arith.constant 0 : index
    %16 = memref.load %arg1[%c0_13] : memref<2xf32, #tpu.memory_space<smem>>
    %17 = vector.broadcast %16 : f32 to vector<2x14x15xf32>
    %18 = arith.addf %15, %17 : vector<2x14x15xf32>
    %19 = vector.shape_cast %18 : vector<2x14x15xf32> to vector<1x2x14x15xf32>
    %cst_14 = arith.constant dense<0.000000e+00> : vector<1xf32>
    %20 = vector.multi_reduction <add>, %19, %cst_14 [1, 2, 3] : vector<1x2x14x15xf32> to vector<1xf32>
    %21 = vector.shape_cast %20 : vector<1xf32> to vector<1x1x1x1xf32>
    %22 = vector.extract %21[0, 0, 0, 0] : f32 from vector<1x1x1x1xf32>
    %cst_15 = arith.constant 0.00238095247 : f32
    %23 = arith.mulf %22, %cst_15 : f32
    %24 = vector.broadcast %23 : f32 to vector<2x14x15xf32>
    %25 = arith.subf %18, %24 : vector<2x14x15xf32>
    %26 = arith.mulf %25, %25 : vector<2x14x15xf32>
    %27 = vector.shape_cast %26 : vector<2x14x15xf32> to vector<1x2x14x15xf32>
    %cst_16 = arith.constant dense<0.000000e+00> : vector<1xf32>
    %28 = vector.multi_reduction <add>, %27, %cst_16 [1, 2, 3] : vector<1x2x14x15xf32> to vector<1xf32>
    %29 = vector.shape_cast %28 : vector<1xf32> to vector<1x1x1x1xf32>
    %30 = vector.extract %29[0, 0, 0, 0] : f32 from vector<1x1x1x1xf32>
    %cst_17 = arith.constant 0.00238095247 : f32
    %31 = arith.mulf %30, %cst_17 : f32
    %cst_18 = arith.constant 9.99999974E-6 : f32
    %32 = arith.addf %31, %cst_18 : f32
    %33 = math.rsqrt %32 : f32
    %c0_19 = arith.constant 0 : index
    %34 = memref.load %arg2[%c0_19] : memref<2xf32, #tpu.memory_space<smem>>
    %35 = arith.mulf %33, %34 : f32
    %36 = vector.broadcast %35 : f32 to vector<2x14x15xf32>
    %37 = arith.mulf %25, %36 : vector<2x14x15xf32>
    %c0_20 = arith.constant 0 : index
    %38 = memref.load %arg3[%c0_20] : memref<2xf32, #tpu.memory_space<smem>>
    %39 = vector.broadcast %38 : f32 to vector<2x14x15xf32>
    %40 = arith.addf %37, %39 : vector<2x14x15xf32>
    %cst_21 = arith.constant 2.000000e-01 : f32
    %41 = vector.broadcast %cst_21 : f32 to vector<2x14x15xf32>
    %42 = arith.mulf %41, %40 : vector<2x14x15xf32>
    %43 = arith.maximumf %40, %42 : vector<2x14x15xf32>
    %44 = vector.extract_strided_slice %43 {offsets = [0, 0, 0], sizes = [2, 1, 15], strides = [1, 1, 1]} : vector<2x14x15xf32> to vector<2x1x15xf32>
    %45 = vector.shape_cast %44 : vector<2x1x15xf32> to vector<2x15xf32>
    %46 = vector.extract_strided_slice %45 {offsets = [0, 0], sizes = [2, 5], strides = [1, 1]} : vector<2x15xf32> to vector<2x5xf32>
    %c0_22 = arith.constant 0 : index
    %c0_23 = arith.constant 0 : index
    %47 = vector.load %arg8[%c0_22, %c0_23] : memref<8x256xf32, #tpu.memory_space<vmem>>, vector<2x5xf32>
    tpu.vector_store %arg8[%c0_22, %c0_23], %46 {strides = array<i32>} : memref<8x256xf32, #tpu.memory_space<vmem>>, vector<2x5xf32>,
    %48 = vector.extract_strided_slice %45 {offsets = [0, 5], sizes = [2, 5], strides = [1, 1]} : vector<2x15xf32> to vector<2x5xf32>
    %c2_24 = arith.constant 2 : index
    %c0_25 = arith.constant 0 : index
    %49 = vector.load %arg8[%c2_24, %c0_25] : memref<8x256xf32, #tpu.memory_space<vmem>>, vector<2x5xf32>
    tpu.vector_store %arg8[%c2_24, %c0_25], %48 {strides = array<i32>} : memref<8x256xf32, #tpu.memory_space<vmem>>, vector<2x5xf32>,
    %50 = vector.extract_strided_slice %45 {offsets = [0, 10], sizes = [2, 5], strides = [1, 1]} : vector<2x15xf32> to vector<2x5xf32>
    %c4 = arith.constant 4 : index
    %c0_26 = arith.constant 0 : index
    %51 = vector.load %arg8[%c4, %c0_26] : memref<8x256xf32, #tpu.memory_space<vmem>>, vector<2x5xf32>
    tpu.vector_store %arg8[%c4, %c0_26], %50 {strides = array<i32>} : memref<8x256xf32, #tpu.memory_space<vmem>>, vector<2x5xf32>,
    %52 = vector.extract_strided_slice %43 {offsets = [0, 1, 0], sizes = [2, 1, 15], strides = [1, 1, 1]} : vector<2x14x15xf32> to vector<2x1x15xf32>
    %53 = vector.shape_cast %52 : vector<2x1x15xf32> to vector<2x15xf32>
    %54 = vector.extract_strided_slice %53 {offsets = [0, 0], sizes = [2, 5], strides = [1, 1]} : vector<2x15xf32> to vector<2x5xf32>
    %c0_27 = arith.constant 0 : index
    %c5 = arith.constant 5 : index
    %55 = vector.load %arg8[%c0_27, %c5] : memref<8x256xf32, #tpu.memory_space<vmem>>, vector<2x5xf32>
    tpu.vector_store %arg8[%c0_27, %c5], %54 {strides = array<i32>} : memref<8x256xf32, #tpu.memory_space<vmem>>, vector<2x5xf32>,
    %56 = vector.extract_strided_slice %53 {offsets = [0, 5], sizes = [2, 5], strides = [1, 1]} : vector<2x15xf32> to vector<2x5xf32>
    %c2_28 = arith.constant 2 : index
    %c5_29 = arith.constant 5 : index
    %57 = vector.load %arg8[%c2_28, %c5_29] : memref<8x256xf32, #tpu.memory_space<vmem>>, vector<2x5xf32>
    tpu.vector_store %arg8[%c2_28, %c5_29], %56 {strides = array<i32>} : memref<8x256xf32, #tpu.memory_space<vmem>>, vector<2x5xf32>,
    %58 = vector.extract_strided_slice %53 {offsets = [0, 10], sizes = [2, 5], strides = [1, 1]} : vector<2x15xf32> to vector<2x5xf32>
    %c4_30 = arith.constant 4 : index
    %c5_31 = arith.constant 5 : index
    %59 = vector.load %arg8[%c4_30, %c5_31] : memref<8x256xf32, #tpu.memory_space<vmem>>, vector<2x5xf32>
    tpu.vector_store %arg8[%c4_30, %c5_31], %58 {strides = array<i32>} : memref<8x256xf32, #tpu.memory_space<vmem>>, vector<2x5xf32>,
    %60 = vector.extract_strided_slice %43 {offsets = [0, 2, 0], sizes = [2, 1, 15], strides = [1, 1, 1]} : vector<2x14x15xf32> to vector<2x1x15xf32>
    %61 = vector.shape_cast %60 : vector<2x1x15xf32> to vector<2x15xf32>
    %62 = vector.extract_strided_slice %61 {offsets = [0, 0], sizes = [2, 5], strides = [1, 1]} : vector<2x15xf32> to vector<2x5xf32>
    %c0_32 = arith.constant 0 : index
    %c10 = arith.constant 10 : index
    %63 = vector.load %arg8[%c0_32, %c10] : memref<8x256xf32, #tpu.memory_space<vmem>>, vector<2x5xf32>
    tpu.vector_store %arg8[%c0_32, %c10], %62 {strides = array<i32>} : memref<8x256xf32, #tpu.memory_space<vmem>>, vector<2x5xf32>,
    %64 = vector.extract_strided_slice %61 {offsets = [0, 5], sizes = [2, 5], strides = [1, 1]} : vector<2x15xf32> to vector<2x5xf32>
    %c2_33 = arith.constant 2 : index
    %c10_34 = arith.constant 10 : index
    %65 = vector.load %arg8[%c2_33, %c10_34] : memref<8x256xf32, #tpu.memory_space<vmem>>, vector<2x5xf32>
    tpu.vector_store %arg8[%c2_33, %c10_34], %64 {strides = array<i32>} : memref<8x256xf32, #tpu.memory_space<vmem>>, vector<2x5xf32>,
    %66 = vector.extract_strided_slice %61 {offsets = [0, 10], sizes = [2, 5], strides = [1, 1]} : vector<2x15xf32> to vector<2x5xf32>
    %c4_35 = arith.constant 4 : index
    %c10_36 = arith.constant 10 : index
    %67 = vector.load %arg8[%c4_35, %c10_36] : memref<8x256xf32, #tpu.memory_space<vmem>>, vector<2x5xf32>
    tpu.vector_store %arg8[%c4_35, %c10_36], %66 {strides = array<i32>} : memref<8x256xf32, #tpu.memory_space<vmem>>, vector<2x5xf32>,
    %68 = vector.extract_strided_slice %43 {offsets = [0, 3, 0], sizes = [2, 1, 15], strides = [1, 1, 1]} : vector<2x14x15xf32> to vector<2x1x15xf32>
    %69 = vector.shape_cast %68 : vector<2x1x15xf32> to vector<2x15xf32>
    %70 = vector.extract_strided_slice %69 {offsets = [0, 0], sizes = [2, 5], strides = [1, 1]} : vector<2x15xf32> to vector<2x5xf32>
    %c0_37 = arith.constant 0 : index
    %c15 = arith.constant 15 : index
    %71 = vector.load %arg8[%c0_37, %c15] : memref<8x256xf32, #tpu.memory_space<vmem>>, vector<2x5xf32>
    tpu.vector_store %arg8[%c0_37, %c15], %70 {strides = array<i32>} : memref<8x256xf32, #tpu.memory_space<vmem>>, vector<2x5xf32>,
    %72 = vector.extract_strided_slice %69 {offsets = [0, 5], sizes = [2, 5], strides = [1, 1]} : vector<2x15xf32> to vector<2x5xf32>
    %c2_38 = arith.constant 2 : index
    %c15_39 = arith.constant 15 : index
    %73 = vector.load %arg8[%c2_38, %c15_39] : memref<8x256xf32, #tpu.memory_space<vmem>>, vector<2x5xf32>
    tpu.vector_store %arg8[%c2_38, %c15_39], %72 {strides = array<i32>} : memref<8x256xf32, #tpu.memory_space<vmem>>, vector<2x5xf32>,
    %74 = vector.extract_strided_slice %69 {offsets = [0, 10], sizes = [2, 5], strides = [1, 1]} : vector<2x15xf32> to vector<2x5xf32>
    %c4_40 = arith.constant 4 : index
    %c15_41 = arith.constant 15 : index
    %75 = vector.load %arg8[%c4_40, %c15_41] : memref<8x256xf32, #tpu.memory_space<vmem>>, vector<2x5xf32>
    tpu.vector_store %arg8[%c4_40, %c15_41], %74 {strides = array<i32>} : memref<8x256xf32, #tpu.memory_space<vmem>>, vector<2x5xf32>,
    %76 = vector.extract_strided_slice %43 {offsets = [0, 4, 0], sizes = [2, 1, 15], strides = [1, 1, 1]} : vector<2x14x15xf32> to vector<2x1x15xf32>
    %77 = vector.shape_cast %76 : vector<2x1x15xf32> to vector<2x15xf32>
    %78 = vector.extract_strided_slice %77 {offsets = [0, 0], sizes = [2, 5], strides = [1, 1]} : vector<2x15xf32> to vector<2x5xf32>
    %c0_42 = arith.constant 0 : index
    %c20 = arith.constant 20 : index
    %79 = vector.load %arg8[%c0_42, %c20] : memref<8x256xf32, #tpu.memory_space<vmem>>, vector<2x5xf32>
    tpu.vector_store %arg8[%c0_42, %c20], %78 {strides = array<i32>} : memref<8x256xf32, #tpu.memory_space<vmem>>, vector<2x5xf32>,
    %80 = vector.extract_strided_slice %77 {offsets = [0, 5], sizes = [2, 5], strides = [1, 1]} : vector<2x15xf32> to vector<2x5xf32>
    %c2_43 = arith.constant 2 : index
    %c20_44 = arith.constant 20 : index
    %81 = vector.load %arg8[%c2_43, %c20_44] : memref<8x256xf32, #tpu.memory_space<vmem>>, vector<2x5xf32>
    tpu.vector_store %arg8[%c2_43, %c20_44], %80 {strides = array<i32>} : memref<8x256xf32, #tpu.memory_space<vmem>>, vector<2x5xf32>,
    %82 = vector.extract_strided_slice %77 {offsets = [0, 10], sizes = [2, 5], strides = [1, 1]} : vector<2x15xf32> to vector<2x5xf32>
    %c4_45 = arith.constant 4 : index
    %c20_46 = arith.constant 20 : index
    %83 = vector.load %arg8[%c4_45, %c20_46] : memref<8x256xf32, #tpu.memory_space<vmem>>, vector<2x5xf32>
    tpu.vector_store %arg8[%c4_45, %c20_46], %82 {strides = array<i32>} : memref<8x256xf32, #tpu.memory_space<vmem>>, vector<2x5xf32>,
    %84 = vector.extract_strided_slice %43 {offsets = [0, 5, 0], sizes = [2, 1, 15], strides = [1, 1, 1]} : vector<2x14x15xf32> to vector<2x1x15xf32>
    %85 = vector.shape_cast %84 : vector<2x1x15xf32> to vector<2x15xf32>
    %86 = vector.extract_strided_slice %85 {offsets = [0, 0], sizes = [2, 5], strides = [1, 1]} : vector<2x15xf32> to vector<2x5xf32>
    %c0_47 = arith.constant 0 : index
    %c25 = arith.constant 25 : index
    %87 = vector.load %arg8[%c0_47, %c25] : memref<8x256xf32, #tpu.memory_space<vmem>>, vector<2x5xf32>
    tpu.vector_store %arg8[%c0_47, %c25], %86 {strides = array<i32>} : memref<8x256xf32, #tpu.memory_space<vmem>>, vector<2x5xf32>,
    %88 = vector.extract_strided_slice %85 {offsets = [0, 5], sizes = [2, 5], strides = [1, 1]} : vector<2x15xf32> to vector<2x5xf32>
    %c2_48 = arith.constant 2 : index
    %c25_49 = arith.constant 25 : index
    %89 = vector.load %arg8[%c2_48, %c25_49] : memref<8x256xf32, #tpu.memory_space<vmem>>, vector<2x5xf32>
    tpu.vector_store %arg8[%c2_48, %c25_49], %88 {strides = array<i32>} : memref<8x256xf32, #tpu.memory_space<vmem>>, vector<2x5xf32>,
    %90 = vector.extract_strided_slice %85 {offsets = [0, 10], sizes = [2, 5], strides = [1, 1]} : vector<2x15xf32> to vector<2x5xf32>
    %c4_50 = arith.constant 4 : index
    %c25_51 = arith.constant 25 : index
    %91 = vector.load %arg8[%c4_50, %c25_51] : memref<8x256xf32, #tpu.memory_space<vmem>>, vector<2x5xf32>
    tpu.vector_store %arg8[%c4_50, %c25_51], %90 {strides = array<i32>} : memref<8x256xf32, #tpu.memory_space<vmem>>, vector<2x5xf32>,
    %92 = vector.extract_strided_slice %43 {offsets = [0, 6, 0], sizes = [2, 1, 15], strides = [1, 1, 1]} : vector<2x14x15xf32> to vector<2x1x15xf32>
    %93 = vector.shape_cast %92 : vector<2x1x15xf32> to vector<2x15xf32>
    %94 = vector.extract_strided_slice %93 {offsets = [0, 0], sizes = [2, 5], strides = [1, 1]} : vector<2x15xf32> to vector<2x5xf32>
    %c0_52 = arith.constant 0 : index
    %c30 = arith.constant 30 : index
    %95 = vector.load %arg8[%c0_52, %c30] : memref<8x256xf32, #tpu.memory_space<vmem>>, vector<2x5xf32>
    tpu.vector_store %arg8[%c0_52, %c30], %94 {strides = array<i32>} : memref<8x256xf32, #tpu.memory_space<vmem>>, vector<2x5xf32>,
    %96 = vector.extract_strided_slice %93 {offsets = [0, 5], sizes = [2, 5], strides = [1, 1]} : vector<2x15xf32> to vector<2x5xf32>
    %c2_53 = arith.constant 2 : index
    %c30_54 = arith.constant 30 : index
    %97 = vector.load %arg8[%c2_53, %c30_54] : memref<8x256xf32, #tpu.memory_space<vmem>>, vector<2x5xf32>
    tpu.vector_store %arg8[%c2_53, %c30_54], %96 {strides = array<i32>} : memref<8x256xf32, #tpu.memory_space<vmem>>, vector<2x5xf32>,
    %98 = vector.extract_strided_slice %93 {offsets = [0, 10], sizes = [2, 5], strides = [1, 1]} : vector<2x15xf32> to vector<2x5xf32>
    %c4_55 = arith.constant 4 : index
    %c30_56 = arith.constant 30 : index
    %99 = vector.load %arg8[%c4_55, %c30_56] : memref<8x256xf32, #tpu.memory_space<vmem>>, vector<2x5xf32>
    tpu.vector_store %arg8[%c4_55, %c30_56], %98 {strides = array<i32>} : memref<8x256xf32, #tpu.memory_space<vmem>>, vector<2x5xf32>,
    %100 = vector.extract_strided_slice %43 {offsets = [0, 7, 0], sizes = [2, 1, 15], strides = [1, 1, 1]} : vector<2x14x15xf32> to vector<2x1x15xf32>
    %101 = vector.shape_cast %100 : vector<2x1x15xf32> to vector<2x15xf32>
    %102 = vector.extract_strided_slice %101 {offsets = [0, 0], sizes = [2, 5], strides = [1, 1]} : vector<2x15xf32> to vector<2x5xf32>
    %c0_57 = arith.constant 0 : index
    %c35 = arith.constant 35 : index
    %103 = vector.load %arg8[%c0_57, %c35] : memref<8x256xf32, #tpu.memory_space<vmem>>, vector<2x5xf32>
    tpu.vector_store %arg8[%c0_57, %c35], %102 {strides = array<i32>} : memref<8x256xf32, #tpu.memory_space<vmem>>, vector<2x5xf32>,
    %104 = vector.extract_strided_slice %101 {offsets = [0, 5], sizes = [2, 5], strides = [1, 1]} : vector<2x15xf32> to vector<2x5xf32>
    %c2_58 = arith.constant 2 : index
    %c35_59 = arith.constant 35 : index
    %105 = vector.load %arg8[%c2_58, %c35_59] : memref<8x256xf32, #tpu.memory_space<vmem>>, vector<2x5xf32>
    tpu.vector_store %arg8[%c2_58, %c35_59], %104 {strides = array<i32>} : memref<8x256xf32, #tpu.memory_space<vmem>>, vector<2x5xf32>,
    %106 = vector.extract_strided_slice %101 {offsets = [0, 10], sizes = [2, 5], strides = [1, 1]} : vector<2x15xf32> to vector<2x5xf32>
    %c4_60 = arith.constant 4 : index
    %c35_61 = arith.constant 35 : index
    %107 = vector.load %arg8[%c4_60, %c35_61] : memref<8x256xf32, #tpu.memory_space<vmem>>, vector<2x5xf32>
    tpu.vector_store %arg8[%c4_60, %c35_61], %106 {strides = array<i32>} : memref<8x256xf32, #tpu.memory_space<vmem>>, vector<2x5xf32>,
    %108 = vector.extract_strided_slice %43 {offsets = [0, 8, 0], sizes = [2, 1, 15], strides = [1, 1, 1]} : vector<2x14x15xf32> to vector<2x1x15xf32>
    %109 = vector.shape_cast %108 : vector<2x1x15xf32> to vector<2x15xf32>
    %110 = vector.extract_strided_slice %109 {offsets = [0, 0], sizes = [2, 5], strides = [1, 1]} : vector<2x15xf32> to vector<2x5xf32>
    %c0_62 = arith.constant 0 : index
    %c40 = arith.constant 40 : index
    %111 = vector.load %arg8[%c0_62, %c40] : memref<8x256xf32, #tpu.memory_space<vmem>>, vector<2x5xf32>
    tpu.vector_store %arg8[%c0_62, %c40], %110 {strides = array<i32>} : memref<8x256xf32, #tpu.memory_space<vmem>>, vector<2x5xf32>,
    %112 = vector.extract_strided_slice %109 {offsets = [0, 5], sizes = [2, 5], strides = [1, 1]} : vector<2x15xf32> to vector<2x5xf32>
    %c2_63 = arith.constant 2 : index
    %c40_64 = arith.constant 40 : index
    %113 = vector.load %arg8[%c2_63, %c40_64] : memref<8x256xf32, #tpu.memory_space<vmem>>, vector<2x5xf32>
    tpu.vector_store %arg8[%c2_63, %c40_64], %112 {strides = array<i32>} : memref<8x256xf32, #tpu.memory_space<vmem>>, vector<2x5xf32>,
    %114 = vector.extract_strided_slice %109 {offsets = [0, 10], sizes = [2, 5], strides = [1, 1]} : vector<2x15xf32> to vector<2x5xf32>
    %c4_65 = arith.constant 4 : index
    %c40_66 = arith.constant 40 : index
    %115 = vector.load %arg8[%c4_65, %c40_66] : memref<8x256xf32, #tpu.memory_space<vmem>>, vector<2x5xf32>
    tpu.vector_store %arg8[%c4_65, %c40_66], %114 {strides = array<i32>} : memref<8x256xf32, #tpu.memory_space<vmem>>, vector<2x5xf32>,
    %116 = vector.extract_strided_slice %43 {offsets = [0, 9, 0], sizes = [2, 1, 15], strides = [1, 1, 1]} : vector<2x14x15xf32> to vector<2x1x15xf32>
    %117 = vector.shape_cast %116 : vector<2x1x15xf32> to vector<2x15xf32>
    %118 = vector.extract_strided_slice %117 {offsets = [0, 0], sizes = [2, 5], strides = [1, 1]} : vector<2x15xf32> to vector<2x5xf32>
    %c0_67 = arith.constant 0 : index
    %c45 = arith.constant 45 : index
    %119 = vector.load %arg8[%c0_67, %c45] : memref<8x256xf32, #tpu.memory_space<vmem>>, vector<2x5xf32>
    tpu.vector_store %arg8[%c0_67, %c45], %118 {strides = array<i32>} : memref<8x256xf32, #tpu.memory_space<vmem>>, vector<2x5xf32>,
    %120 = vector.extract_strided_slice %117 {offsets = [0, 5], sizes = [2, 5], strides = [1, 1]} : vector<2x15xf32> to vector<2x5xf32>
    %c2_68 = arith.constant 2 : index
    %c45_69 = arith.constant 45 : index
    %121 = vector.load %arg8[%c2_68, %c45_69] : memref<8x256xf32, #tpu.memory_space<vmem>>, vector<2x5xf32>
    tpu.vector_store %arg8[%c2_68, %c45_69], %120 {strides = array<i32>} : memref<8x256xf32, #tpu.memory_space<vmem>>, vector<2x5xf32>,
    %122 = vector.extract_strided_slice %117 {offsets = [0, 10], sizes = [2, 5], strides = [1, 1]} : vector<2x15xf32> to vector<2x5xf32>
    %c4_70 = arith.constant 4 : index
    %c45_71 = arith.constant 45 : index
    %123 = vector.load %arg8[%c4_70, %c45_71] : memref<8x256xf32, #tpu.memory_space<vmem>>, vector<2x5xf32>
    tpu.vector_store %arg8[%c4_70, %c45_71], %122 {strides = array<i32>} : memref<8x256xf32, #tpu.memory_space<vmem>>, vector<2x5xf32>,
    %124 = vector.extract_strided_slice %43 {offsets = [0, 10, 0], sizes = [2, 1, 15], strides = [1, 1, 1]} : vector<2x14x15xf32> to vector<2x1x15xf32>
    %125 = vector.shape_cast %124 : vector<2x1x15xf32> to vector<2x15xf32>
    %126 = vector.extract_strided_slice %125 {offsets = [0, 0], sizes = [2, 5], strides = [1, 1]} : vector<2x15xf32> to vector<2x5xf32>
    %c0_72 = arith.constant 0 : index
    %c50 = arith.constant 50 : index
    %127 = vector.load %arg8[%c0_72, %c50] : memref<8x256xf32, #tpu.memory_space<vmem>>, vector<2x5xf32>
    tpu.vector_store %arg8[%c0_72, %c50], %126 {strides = array<i32>} : memref<8x256xf32, #tpu.memory_space<vmem>>, vector<2x5xf32>,
    %128 = vector.extract_strided_slice %125 {offsets = [0, 5], sizes = [2, 5], strides = [1, 1]} : vector<2x15xf32> to vector<2x5xf32>
    %c2_73 = arith.constant 2 : index
    %c50_74 = arith.constant 50 : index
    %129 = vector.load %arg8[%c2_73, %c50_74] : memref<8x256xf32, #tpu.memory_space<vmem>>, vector<2x5xf32>
    tpu.vector_store %arg8[%c2_73, %c50_74], %128 {strides = array<i32>} : memref<8x256xf32, #tpu.memory_space<vmem>>, vector<2x5xf32>,
    %130 = vector.extract_strided_slice %125 {offsets = [0, 10], sizes = [2, 5], strides = [1, 1]} : vector<2x15xf32> to vector<2x5xf32>
    %c4_75 = arith.constant 4 : index
    %c50_76 = arith.constant 50 : index
    %131 = vector.load %arg8[%c4_75, %c50_76] : memref<8x256xf32, #tpu.memory_space<vmem>>, vector<2x5xf32>
    tpu.vector_store %arg8[%c4_75, %c50_76], %130 {strides = array<i32>} : memref<8x256xf32, #tpu.memory_space<vmem>>, vector<2x5xf32>,
    %132 = vector.extract_strided_slice %43 {offsets = [0, 11, 0], sizes = [2, 1, 15], strides = [1, 1, 1]} : vector<2x14x15xf32> to vector<2x1x15xf32>
    %133 = vector.shape_cast %132 : vector<2x1x15xf32> to vector<2x15xf32>
    %134 = vector.extract_strided_slice %133 {offsets = [0, 0], sizes = [2, 5], strides = [1, 1]} : vector<2x15xf32> to vector<2x5xf32>
    %c0_77 = arith.constant 0 : index
    %c55 = arith.constant 55 : index
    %135 = vector.load %arg8[%c0_77, %c55] : memref<8x256xf32, #tpu.memory_space<vmem>>, vector<2x5xf32>
    tpu.vector_store %arg8[%c0_77, %c55], %134 {strides = array<i32>} : memref<8x256xf32, #tpu.memory_space<vmem>>, vector<2x5xf32>,
    %136 = vector.extract_strided_slice %133 {offsets = [0, 5], sizes = [2, 5], strides = [1, 1]} : vector<2x15xf32> to vector<2x5xf32>
    %c2_78 = arith.constant 2 : index
    %c55_79 = arith.constant 55 : index
    %137 = vector.load %arg8[%c2_78, %c55_79] : memref<8x256xf32, #tpu.memory_space<vmem>>, vector<2x5xf32>
    tpu.vector_store %arg8[%c2_78, %c55_79], %136 {strides = array<i32>} : memref<8x256xf32, #tpu.memory_space<vmem>>, vector<2x5xf32>,
    %138 = vector.extract_strided_slice %133 {offsets = [0, 10], sizes = [2, 5], strides = [1, 1]} : vector<2x15xf32> to vector<2x5xf32>
    %c4_80 = arith.constant 4 : index
    %c55_81 = arith.constant 55 : index
    %139 = vector.load %arg8[%c4_80, %c55_81] : memref<8x256xf32, #tpu.memory_space<vmem>>, vector<2x5xf32>
    tpu.vector_store %arg8[%c4_80, %c55_81], %138 {strides = array<i32>} : memref<8x256xf32, #tpu.memory_space<vmem>>, vector<2x5xf32>,
    %140 = vector.extract_strided_slice %43 {offsets = [0, 12, 0], sizes = [2, 1, 15], strides = [1, 1, 1]} : vector<2x14x15xf32> to vector<2x1x15xf32>
    %141 = vector.shape_cast %140 : vector<2x1x15xf32> to vector<2x15xf32>
    %142 = vector.extract_strided_slice %141 {offsets = [0, 0], sizes = [2, 5], strides = [1, 1]} : vector<2x15xf32> to vector<2x5xf32>
    %c0_82 = arith.constant 0 : index
    %c60 = arith.constant 60 : index
    %143 = vector.load %arg8[%c0_82, %c60] : memref<8x256xf32, #tpu.memory_space<vmem>>, vector<2x5xf32>
    tpu.vector_store %arg8[%c0_82, %c60], %142 {strides = array<i32>} : memref<8x256xf32, #tpu.memory_space<vmem>>, vector<2x5xf32>,
    %144 = vector.extract_strided_slice %141 {offsets = [0, 5], sizes = [2, 5], strides = [1, 1]} : vector<2x15xf32> to vector<2x5xf32>
    %c2_83 = arith.constant 2 : index
    %c60_84 = arith.constant 60 : index
    %145 = vector.load %arg8[%c2_83, %c60_84] : memref<8x256xf32, #tpu.memory_space<vmem>>, vector<2x5xf32>
    tpu.vector_store %arg8[%c2_83, %c60_84], %144 {strides = array<i32>} : memref<8x256xf32, #tpu.memory_space<vmem>>, vector<2x5xf32>,
    %146 = vector.extract_strided_slice %141 {offsets = [0, 10], sizes = [2, 5], strides = [1, 1]} : vector<2x15xf32> to vector<2x5xf32>
    %c4_85 = arith.constant 4 : index
    %c60_86 = arith.constant 60 : index
    %147 = vector.load %arg8[%c4_85, %c60_86] : memref<8x256xf32, #tpu.memory_space<vmem>>, vector<2x5xf32>
    tpu.vector_store %arg8[%c4_85, %c60_86], %146 {strides = array<i32>} : memref<8x256xf32, #tpu.memory_space<vmem>>, vector<2x5xf32>,
    %148 = vector.extract_strided_slice %43 {offsets = [0, 13, 0], sizes = [2, 1, 15], strides = [1, 1, 1]} : vector<2x14x15xf32> to vector<2x1x15xf32>
    %149 = vector.shape_cast %148 : vector<2x1x15xf32> to vector<2x15xf32>
    %150 = vector.extract_strided_slice %149 {offsets = [0, 0], sizes = [2, 5], strides = [1, 1]} : vector<2x15xf32> to vector<2x5xf32>
    %c0_87 = arith.constant 0 : index
    %c65 = arith.constant 65 : index
    %151 = vector.load %arg8[%c0_87, %c65] : memref<8x256xf32, #tpu.memory_space<vmem>>, vector<2x5xf32>
    tpu.vector_store %arg8[%c0_87, %c65], %150 {strides = array<i32>} : memref<8x256xf32, #tpu.memory_space<vmem>>, vector<2x5xf32>,
    %152 = vector.extract_strided_slice %149 {offsets = [0, 5], sizes = [2, 5], strides = [1, 1]} : vector<2x15xf32> to vector<2x5xf32>
    %c2_88 = arith.constant 2 : index
    %c65_89 = arith.constant 65 : index
    %153 = vector.load %arg8[%c2_88, %c65_89] : memref<8x256xf32, #tpu.memory_space<vmem>>, vector<2x5xf32>
    tpu.vector_store %arg8[%c2_88, %c65_89], %152 {strides = array<i32>} : memref<8x256xf32, #tpu.memory_space<vmem>>, vector<2x5xf32>,
    %154 = vector.extract_strided_slice %149 {offsets = [0, 10], sizes = [2, 5], strides = [1, 1]} : vector<2x15xf32> to vector<2x5xf32>
    %c4_90 = arith.constant 4 : index
    %c65_91 = arith.constant 65 : index
    %155 = vector.load %arg8[%c4_90, %c65_91] : memref<8x256xf32, #tpu.memory_space<vmem>>, vector<2x5xf32>
    tpu.vector_store %arg8[%c4_90, %c65_91], %154 {strides = array<i32>} : memref<8x256xf32, #tpu.memory_space<vmem>>, vector<2x5xf32>,
    %c1_92 = arith.constant 1 : index
    %c0_93 = arith.constant 0 : index
    %156 = memref.load %arg0[%c1_92, %c0_93] : memref<2x3xf32, #tpu.memory_space<smem>>
    %157 = vector.broadcast %156 : f32 to vector<2x14x15xf32>
    %158 = arith.mulf %157, %2 : vector<2x14x15xf32>
    %c1_94 = arith.constant 1 : index
    %c1_95 = arith.constant 1 : index
    %159 = memref.load %arg0[%c1_94, %c1_95] : memref<2x3xf32, #tpu.memory_space<smem>>
    %160 = vector.broadcast %159 : f32 to vector<2x14x15xf32>
    %161 = arith.mulf %160, %3 : vector<2x14x15xf32>
    %162 = arith.addf %158, %161 : vector<2x14x15xf32>
    %c1_96 = arith.constant 1 : index
    %c2_97 = arith.constant 2 : index
    %163 = memref.load %arg0[%c1_96, %c2_97] : memref<2x3xf32, #tpu.memory_space<smem>>
    %164 = vector.broadcast %163 : f32 to vector<2x14x15xf32>
    %165 = arith.mulf %164, %4 : vector<2x14x15xf32>
    %166 = arith.addf %162, %165 : vector<2x14x15xf32>
    %c1_98 = arith.constant 1 : index
    %167 = memref.load %arg1[%c1_98] : memref<2xf32, #tpu.memory_space<smem>>
    %168 = vector.broadcast %167 : f32 to vector<2x14x15xf32>
    %169 = arith.addf %166, %168 : vector<2x14x15xf32>
    %170 = vector.shape_cast %169 : vector<2x14x15xf32> to vector<1x2x14x15xf32>
    %cst_99 = arith.constant dense<0.000000e+00> : vector<1xf32>
    %171 = vector.multi_reduction <add>, %170, %cst_99 [1, 2, 3] : vector<1x2x14x15xf32> to vector<1xf32>
    %172 = vector.shape_cast %171 : vector<1xf32> to vector<1x1x1x1xf32>
    %173 = vector.extract %172[0, 0, 0, 0] : f32 from vector<1x1x1x1xf32>
    %cst_100 = arith.constant 0.00238095247 : f32
    %174 = arith.mulf %173, %cst_100 : f32
    %175 = vector.broadcast %174 : f32 to vector<2x14x15xf32>
    %176 = arith.subf %169, %175 : vector<2x14x15xf32>
    %177 = arith.mulf %176, %176 : vector<2x14x15xf32>
    %178 = vector.shape_cast %177 : vector<2x14x15xf32> to vector<1x2x14x15xf32>
    %cst_101 = arith.constant dense<0.000000e+00> : vector<1xf32>
    %179 = vector.multi_reduction <add>, %178, %cst_101 [1, 2, 3] : vector<1x2x14x15xf32> to vector<1xf32>
    %180 = vector.shape_cast %179 : vector<1xf32> to vector<1x1x1x1xf32>
    %181 = vector.extract %180[0, 0, 0, 0] : f32 from vector<1x1x1x1xf32>
    %cst_102 = arith.constant 0.00238095247 : f32
    %182 = arith.mulf %181, %cst_102 : f32
    %cst_103 = arith.constant 9.99999974E-6 : f32
    %183 = arith.addf %182, %cst_103 : f32
    %184 = math.rsqrt %183 : f32
    %c1_104 = arith.constant 1 : index
    %185 = memref.load %arg2[%c1_104] : memref<2xf32, #tpu.memory_space<smem>>
    %186 = arith.mulf %184, %185 : f32
    %187 = vector.broadcast %186 : f32 to vector<2x14x15xf32>
    %188 = arith.mulf %176, %187 : vector<2x14x15xf32>
    %c1_105 = arith.constant 1 : index
    %189 = memref.load %arg3[%c1_105] : memref<2xf32, #tpu.memory_space<smem>>
    %190 = vector.broadcast %189 : f32 to vector<2x14x15xf32>
    %191 = arith.addf %188, %190 : vector<2x14x15xf32>
    %cst_106 = arith.constant 2.000000e-01 : f32
    %192 = vector.broadcast %cst_106 : f32 to vector<2x14x15xf32>
    %193 = arith.mulf %192, %191 : vector<2x14x15xf32>
    %194 = arith.maximumf %191, %193 : vector<2x14x15xf32>
    %195 = vector.extract_strided_slice %194 {offsets = [0, 0, 0], sizes = [2, 1, 15], strides = [1, 1, 1]} : vector<2x14x15xf32> to vector<2x1x15xf32>
    %196 = vector.shape_cast %195 : vector<2x1x15xf32> to vector<2x15xf32>
    %197 = vector.extract_strided_slice %196 {offsets = [0, 0], sizes = [2, 5], strides = [1, 1]} : vector<2x15xf32> to vector<2x5xf32>
    %c0_107 = arith.constant 0 : index
    %c70 = arith.constant 70 : index
    %198 = vector.load %arg8[%c0_107, %c70] : memref<8x256xf32, #tpu.memory_space<vmem>>, vector<2x5xf32>
    tpu.vector_store %arg8[%c0_107, %c70], %197 {strides = array<i32>} : memref<8x256xf32, #tpu.memory_space<vmem>>, vector<2x5xf32>,
    %199 = vector.extract_strided_slice %196 {offsets = [0, 5], sizes = [2, 5], strides = [1, 1]} : vector<2x15xf32> to vector<2x5xf32>
    %c2_108 = arith.constant 2 : index
    %c70_109 = arith.constant 70 : index
    %200 = vector.load %arg8[%c2_108, %c70_109] : memref<8x256xf32, #tpu.memory_space<vmem>>, vector<2x5xf32>
    tpu.vector_store %arg8[%c2_108, %c70_109], %199 {strides = array<i32>} : memref<8x256xf32, #tpu.memory_space<vmem>>, vector<2x5xf32>,
    %201 = vector.extract_strided_slice %196 {offsets = [0, 10], sizes = [2, 5], strides = [1, 1]} : vector<2x15xf32> to vector<2x5xf32>
    %c4_110 = arith.constant 4 : index
    %c70_111 = arith.constant 70 : index
    %202 = vector.load %arg8[%c4_110, %c70_111] : memref<8x256xf32, #tpu.memory_space<vmem>>, vector<2x5xf32>
    tpu.vector_store %arg8[%c4_110, %c70_111], %201 {strides = array<i32>} : memref<8x256xf32, #tpu.memory_space<vmem>>, vector<2x5xf32>,
    %203 = vector.extract_strided_slice %194 {offsets = [0, 1, 0], sizes = [2, 1, 15], strides = [1, 1, 1]} : vector<2x14x15xf32> to vector<2x1x15xf32>
    %204 = vector.shape_cast %203 : vector<2x1x15xf32> to vector<2x15xf32>
    %205 = vector.extract_strided_slice %204 {offsets = [0, 0], sizes = [2, 5], strides = [1, 1]} : vector<2x15xf32> to vector<2x5xf32>
    %c0_112 = arith.constant 0 : index
    %c75 = arith.constant 75 : index
    %206 = vector.load %arg8[%c0_112, %c75] : memref<8x256xf32, #tpu.memory_space<vmem>>, vector<2x5xf32>
    tpu.vector_store %arg8[%c0_112, %c75], %205 {strides = array<i32>} : memref<8x256xf32, #tpu.memory_space<vmem>>, vector<2x5xf32>,
    %207 = vector.extract_strided_slice %204 {offsets = [0, 5], sizes = [2, 5], strides = [1, 1]} : vector<2x15xf32> to vector<2x5xf32>
    %c2_113 = arith.constant 2 : index
    %c75_114 = arith.constant 75 : index
    %208 = vector.load %arg8[%c2_113, %c75_114] : memref<8x256xf32, #tpu.memory_space<vmem>>, vector<2x5xf32>
    tpu.vector_store %arg8[%c2_113, %c75_114], %207 {strides = array<i32>} : memref<8x256xf32, #tpu.memory_space<vmem>>, vector<2x5xf32>,
    %209 = vector.extract_strided_slice %204 {offsets = [0, 10], sizes = [2, 5], strides = [1, 1]} : vector<2x15xf32> to vector<2x5xf32>
    %c4_115 = arith.constant 4 : index
    %c75_116 = arith.constant 75 : index
    %210 = vector.load %arg8[%c4_115, %c75_116] : memref<8x256xf32, #tpu.memory_space<vmem>>, vector<2x5xf32>
    tpu.vector_store %arg8[%c4_115, %c75_116], %209 {strides = array<i32>} : memref<8x256xf32, #tpu.memory_space<vmem>>, vector<2x5xf32>,
    %211 = vector.extract_strided_slice %194 {offsets = [0, 2, 0], sizes = [2, 1, 15], strides = [1, 1, 1]} : vector<2x14x15xf32> to vector<2x1x15xf32>
    %212 = vector.shape_cast %211 : vector<2x1x15xf32> to vector<2x15xf32>
    %213 = vector.extract_strided_slice %212 {offsets = [0, 0], sizes = [2, 5], strides = [1, 1]} : vector<2x15xf32> to vector<2x5xf32>
    %c0_117 = arith.constant 0 : index
    %c80 = arith.constant 80 : index
    %214 = vector.load %arg8[%c0_117, %c80] : memref<8x256xf32, #tpu.memory_space<vmem>>, vector<2x5xf32>
    tpu.vector_store %arg8[%c0_117, %c80], %213 {strides = array<i32>} : memref<8x256xf32, #tpu.memory_space<vmem>>, vector<2x5xf32>,
    %215 = vector.extract_strided_slice %212 {offsets = [0, 5], sizes = [2, 5], strides = [1, 1]} : vector<2x15xf32> to vector<2x5xf32>
    %c2_118 = arith.constant 2 : index
    %c80_119 = arith.constant 80 : index
    %216 = vector.load %arg8[%c2_118, %c80_119] : memref<8x256xf32, #tpu.memory_space<vmem>>, vector<2x5xf32>
    tpu.vector_store %arg8[%c2_118, %c80_119], %215 {strides = array<i32>} : memref<8x256xf32, #tpu.memory_space<vmem>>, vector<2x5xf32>,
    %217 = vector.extract_strided_slice %212 {offsets = [0, 10], sizes = [2, 5], strides = [1, 1]} : vector<2x15xf32> to vector<2x5xf32>
    %c4_120 = arith.constant 4 : index
    %c80_121 = arith.constant 80 : index
    %218 = vector.load %arg8[%c4_120, %c80_121] : memref<8x256xf32, #tpu.memory_space<vmem>>, vector<2x5xf32>
    tpu.vector_store %arg8[%c4_120, %c80_121], %217 {strides = array<i32>} : memref<8x256xf32, #tpu.memory_space<vmem>>, vector<2x5xf32>,
    %219 = vector.extract_strided_slice %194 {offsets = [0, 3, 0], sizes = [2, 1, 15], strides = [1, 1, 1]} : vector<2x14x15xf32> to vector<2x1x15xf32>
    %220 = vector.shape_cast %219 : vector<2x1x15xf32> to vector<2x15xf32>
    %221 = vector.extract_strided_slice %220 {offsets = [0, 0], sizes = [2, 5], strides = [1, 1]} : vector<2x15xf32> to vector<2x5xf32>
    %c0_122 = arith.constant 0 : index
    %c85 = arith.constant 85 : index
    %222 = vector.load %arg8[%c0_122, %c85] : memref<8x256xf32, #tpu.memory_space<vmem>>, vector<2x5xf32>
    tpu.vector_store %arg8[%c0_122, %c85], %221 {strides = array<i32>} : memref<8x256xf32, #tpu.memory_space<vmem>>, vector<2x5xf32>,
    %223 = vector.extract_strided_slice %220 {offsets = [0, 5], sizes = [2, 5], strides = [1, 1]} : vector<2x15xf32> to vector<2x5xf32>
    %c2_123 = arith.constant 2 : index
    %c85_124 = arith.constant 85 : index
    %224 = vector.load %arg8[%c2_123, %c85_124] : memref<8x256xf32, #tpu.memory_space<vmem>>, vector<2x5xf32>
    tpu.vector_store %arg8[%c2_123, %c85_124], %223 {strides = array<i32>} : memref<8x256xf32, #tpu.memory_space<vmem>>, vector<2x5xf32>,
    %225 = vector.extract_strided_slice %220 {offsets = [0, 10], sizes = [2, 5], strides = [1, 1]} : vector<2x15xf32> to vector<2x5xf32>
    %c4_125 = arith.constant 4 : index
    %c85_126 = arith.constant 85 : index
    %226 = vector.load %arg8[%c4_125, %c85_126] : memref<8x256xf32, #tpu.memory_space<vmem>>, vector<2x5xf32>
    tpu.vector_store %arg8[%c4_125, %c85_126], %225 {strides = array<i32>} : memref<8x256xf32, #tpu.memory_space<vmem>>, vector<2x5xf32>,
    %227 = vector.extract_strided_slice %194 {offsets = [0, 4, 0], sizes = [2, 1, 15], strides = [1, 1, 1]} : vector<2x14x15xf32> to vector<2x1x15xf32>
    %228 = vector.shape_cast %227 : vector<2x1x15xf32> to vector<2x15xf32>
    %229 = vector.extract_strided_slice %228 {offsets = [0, 0], sizes = [2, 5], strides = [1, 1]} : vector<2x15xf32> to vector<2x5xf32>
    %c0_127 = arith.constant 0 : index
    %c90 = arith.constant 90 : index
    %230 = vector.load %arg8[%c0_127, %c90] : memref<8x256xf32, #tpu.memory_space<vmem>>, vector<2x5xf32>
    tpu.vector_store %arg8[%c0_127, %c90], %229 {strides = array<i32>} : memref<8x256xf32, #tpu.memory_space<vmem>>, vector<2x5xf32>,
    %231 = vector.extract_strided_slice %228 {offsets = [0, 5], sizes = [2, 5], strides = [1, 1]} : vector<2x15xf32> to vector<2x5xf32>
    %c2_128 = arith.constant 2 : index
    %c90_129 = arith.constant 90 : index
    %232 = vector.load %arg8[%c2_128, %c90_129] : memref<8x256xf32, #tpu.memory_space<vmem>>, vector<2x5xf32>
    tpu.vector_store %arg8[%c2_128, %c90_129], %231 {strides = array<i32>} : memref<8x256xf32, #tpu.memory_space<vmem>>, vector<2x5xf32>,
    %233 = vector.extract_strided_slice %228 {offsets = [0, 10], sizes = [2, 5], strides = [1, 1]} : vector<2x15xf32> to vector<2x5xf32>
    %c4_130 = arith.constant 4 : index
    %c90_131 = arith.constant 90 : index
    %234 = vector.load %arg8[%c4_130, %c90_131] : memref<8x256xf32, #tpu.memory_space<vmem>>, vector<2x5xf32>
    tpu.vector_store %arg8[%c4_130, %c90_131], %233 {strides = array<i32>} : memref<8x256xf32, #tpu.memory_space<vmem>>, vector<2x5xf32>,
    %235 = vector.extract_strided_slice %194 {offsets = [0, 5, 0], sizes = [2, 1, 15], strides = [1, 1, 1]} : vector<2x14x15xf32> to vector<2x1x15xf32>
    %236 = vector.shape_cast %235 : vector<2x1x15xf32> to vector<2x15xf32>
    %237 = vector.extract_strided_slice %236 {offsets = [0, 0], sizes = [2, 5], strides = [1, 1]} : vector<2x15xf32> to vector<2x5xf32>
    %c0_132 = arith.constant 0 : index
    %c95 = arith.constant 95 : index
    %238 = vector.load %arg8[%c0_132, %c95] : memref<8x256xf32, #tpu.memory_space<vmem>>, vector<2x5xf32>
    tpu.vector_store %arg8[%c0_132, %c95], %237 {strides = array<i32>} : memref<8x256xf32, #tpu.memory_space<vmem>>, vector<2x5xf32>,
    %239 = vector.extract_strided_slice %236 {offsets = [0, 5], sizes = [2, 5], strides = [1, 1]} : vector<2x15xf32> to vector<2x5xf32>
    %c2_133 = arith.constant 2 : index
    %c95_134 = arith.constant 95 : index
    %240 = vector.load %arg8[%c2_133, %c95_134] : memref<8x256xf32, #tpu.memory_space<vmem>>, vector<2x5xf32>
    tpu.vector_store %arg8[%c2_133, %c95_134], %239 {strides = array<i32>} : memref<8x256xf32, #tpu.memory_space<vmem>>, vector<2x5xf32>,
    %241 = vector.extract_strided_slice %236 {offsets = [0, 10], sizes = [2, 5], strides = [1, 1]} : vector<2x15xf32> to vector<2x5xf32>
    %c4_135 = arith.constant 4 : index
    %c95_136 = arith.constant 95 : index
    %242 = vector.load %arg8[%c4_135, %c95_136] : memref<8x256xf32, #tpu.memory_space<vmem>>, vector<2x5xf32>
    tpu.vector_store %arg8[%c4_135, %c95_136], %241 {strides = array<i32>} : memref<8x256xf32, #tpu.memory_space<vmem>>, vector<2x5xf32>,
    %243 = vector.extract_strided_slice %194 {offsets = [0, 6, 0], sizes = [2, 1, 15], strides = [1, 1, 1]} : vector<2x14x15xf32> to vector<2x1x15xf32>
    %244 = vector.shape_cast %243 : vector<2x1x15xf32> to vector<2x15xf32>
    %245 = vector.extract_strided_slice %244 {offsets = [0, 0], sizes = [2, 5], strides = [1, 1]} : vector<2x15xf32> to vector<2x5xf32>
    %c0_137 = arith.constant 0 : index
    %c100 = arith.constant 100 : index
    %246 = vector.load %arg8[%c0_137, %c100] : memref<8x256xf32, #tpu.memory_space<vmem>>, vector<2x5xf32>
    tpu.vector_store %arg8[%c0_137, %c100], %245 {strides = array<i32>} : memref<8x256xf32, #tpu.memory_space<vmem>>, vector<2x5xf32>,
    %247 = vector.extract_strided_slice %244 {offsets = [0, 5], sizes = [2, 5], strides = [1, 1]} : vector<2x15xf32> to vector<2x5xf32>
    %c2_138 = arith.constant 2 : index
    %c100_139 = arith.constant 100 : index
    %248 = vector.load %arg8[%c2_138, %c100_139] : memref<8x256xf32, #tpu.memory_space<vmem>>, vector<2x5xf32>
    tpu.vector_store %arg8[%c2_138, %c100_139], %247 {strides = array<i32>} : memref<8x256xf32, #tpu.memory_space<vmem>>, vector<2x5xf32>,
    %249 = vector.extract_strided_slice %244 {offsets = [0, 10], sizes = [2, 5], strides = [1, 1]} : vector<2x15xf32> to vector<2x5xf32>
    %c4_140 = arith.constant 4 : index
    %c100_141 = arith.constant 100 : index
    %250 = vector.load %arg8[%c4_140, %c100_141] : memref<8x256xf32, #tpu.memory_space<vmem>>, vector<2x5xf32>
    tpu.vector_store %arg8[%c4_140, %c100_141], %249 {strides = array<i32>} : memref<8x256xf32, #tpu.memory_space<vmem>>, vector<2x5xf32>,
    %251 = vector.extract_strided_slice %194 {offsets = [0, 7, 0], sizes = [2, 1, 15], strides = [1, 1, 1]} : vector<2x14x15xf32> to vector<2x1x15xf32>
    %252 = vector.shape_cast %251 : vector<2x1x15xf32> to vector<2x15xf32>
    %253 = vector.extract_strided_slice %252 {offsets = [0, 0], sizes = [2, 5], strides = [1, 1]} : vector<2x15xf32> to vector<2x5xf32>
    %c0_142 = arith.constant 0 : index
    %c105 = arith.constant 105 : index
    %254 = vector.load %arg8[%c0_142, %c105] : memref<8x256xf32, #tpu.memory_space<vmem>>, vector<2x5xf32>
    tpu.vector_store %arg8[%c0_142, %c105], %253 {strides = array<i32>} : memref<8x256xf32, #tpu.memory_space<vmem>>, vector<2x5xf32>,
    %255 = vector.extract_strided_slice %252 {offsets = [0, 5], sizes = [2, 5], strides = [1, 1]} : vector<2x15xf32> to vector<2x5xf32>
    %c2_143 = arith.constant 2 : index
    %c105_144 = arith.constant 105 : index
    %256 = vector.load %arg8[%c2_143, %c105_144] : memref<8x256xf32, #tpu.memory_space<vmem>>, vector<2x5xf32>
    tpu.vector_store %arg8[%c2_143, %c105_144], %255 {strides = array<i32>} : memref<8x256xf32, #tpu.memory_space<vmem>>, vector<2x5xf32>,
    %257 = vector.extract_strided_slice %252 {offsets = [0, 10], sizes = [2, 5], strides = [1, 1]} : vector<2x15xf32> to vector<2x5xf32>
    %c4_145 = arith.constant 4 : index
    %c105_146 = arith.constant 105 : index
    %258 = vector.load %arg8[%c4_145, %c105_146] : memref<8x256xf32, #tpu.memory_space<vmem>>, vector<2x5xf32>
    tpu.vector_store %arg8[%c4_145, %c105_146], %257 {strides = array<i32>} : memref<8x256xf32, #tpu.memory_space<vmem>>, vector<2x5xf32>,
    %259 = vector.extract_strided_slice %194 {offsets = [0, 8, 0], sizes = [2, 1, 15], strides = [1, 1, 1]} : vector<2x14x15xf32> to vector<2x1x15xf32>
    %260 = vector.shape_cast %259 : vector<2x1x15xf32> to vector<2x15xf32>
    %261 = vector.extract_strided_slice %260 {offsets = [0, 0], sizes = [2, 5], strides = [1, 1]} : vector<2x15xf32> to vector<2x5xf32>
    %c0_147 = arith.constant 0 : index
    %c110 = arith.constant 110 : index
    %262 = vector.load %arg8[%c0_147, %c110] : memref<8x256xf32, #tpu.memory_space<vmem>>, vector<2x5xf32>
    tpu.vector_store %arg8[%c0_147, %c110], %261 {strides = array<i32>} : memref<8x256xf32, #tpu.memory_space<vmem>>, vector<2x5xf32>,
    %263 = vector.extract_strided_slice %260 {offsets = [0, 5], sizes = [2, 5], strides = [1, 1]} : vector<2x15xf32> to vector<2x5xf32>
    %c2_148 = arith.constant 2 : index
    %c110_149 = arith.constant 110 : index
    %264 = vector.load %arg8[%c2_148, %c110_149] : memref<8x256xf32, #tpu.memory_space<vmem>>, vector<2x5xf32>
    tpu.vector_store %arg8[%c2_148, %c110_149], %263 {strides = array<i32>} : memref<8x256xf32, #tpu.memory_space<vmem>>, vector<2x5xf32>,
    %265 = vector.extract_strided_slice %260 {offsets = [0, 10], sizes = [2, 5], strides = [1, 1]} : vector<2x15xf32> to vector<2x5xf32>
    %c4_150 = arith.constant 4 : index
    %c110_151 = arith.constant 110 : index
    %266 = vector.load %arg8[%c4_150, %c110_151] : memref<8x256xf32, #tpu.memory_space<vmem>>, vector<2x5xf32>
    tpu.vector_store %arg8[%c4_150, %c110_151], %265 {strides = array<i32>} : memref<8x256xf32, #tpu.memory_space<vmem>>, vector<2x5xf32>,
    %267 = vector.extract_strided_slice %194 {offsets = [0, 9, 0], sizes = [2, 1, 15], strides = [1, 1, 1]} : vector<2x14x15xf32> to vector<2x1x15xf32>
    %268 = vector.shape_cast %267 : vector<2x1x15xf32> to vector<2x15xf32>
    %269 = vector.extract_strided_slice %268 {offsets = [0, 0], sizes = [2, 5], strides = [1, 1]} : vector<2x15xf32> to vector<2x5xf32>
    %c0_152 = arith.constant 0 : index
    %c115 = arith.constant 115 : index
    %270 = vector.load %arg8[%c0_152, %c115] : memref<8x256xf32, #tpu.memory_space<vmem>>, vector<2x5xf32>
    tpu.vector_store %arg8[%c0_152, %c115], %269 {strides = array<i32>} : memref<8x256xf32, #tpu.memory_space<vmem>>, vector<2x5xf32>,
    %271 = vector.extract_strided_slice %268 {offsets = [0, 5], sizes = [2, 5], strides = [1, 1]} : vector<2x15xf32> to vector<2x5xf32>
    %c2_153 = arith.constant 2 : index
    %c115_154 = arith.constant 115 : index
    %272 = vector.load %arg8[%c2_153, %c115_154] : memref<8x256xf32, #tpu.memory_space<vmem>>, vector<2x5xf32>
    tpu.vector_store %arg8[%c2_153, %c115_154], %271 {strides = array<i32>} : memref<8x256xf32, #tpu.memory_space<vmem>>, vector<2x5xf32>,
    %273 = vector.extract_strided_slice %268 {offsets = [0, 10], sizes = [2, 5], strides = [1, 1]} : vector<2x15xf32> to vector<2x5xf32>
    %c4_155 = arith.constant 4 : index
    %c115_156 = arith.constant 115 : index
    %274 = vector.load %arg8[%c4_155, %c115_156] : memref<8x256xf32, #tpu.memory_space<vmem>>, vector<2x5xf32>
    tpu.vector_store %arg8[%c4_155, %c115_156], %273 {strides = array<i32>} : memref<8x256xf32, #tpu.memory_space<vmem>>, vector<2x5xf32>,
    %275 = vector.extract_strided_slice %194 {offsets = [0, 10, 0], sizes = [2, 1, 15], strides = [1, 1, 1]} : vector<2x14x15xf32> to vector<2x1x15xf32>
    %276 = vector.shape_cast %275 : vector<2x1x15xf32> to vector<2x15xf32>
    %277 = vector.extract_strided_slice %276 {offsets = [0, 0], sizes = [2, 5], strides = [1, 1]} : vector<2x15xf32> to vector<2x5xf32>
    %c0_157 = arith.constant 0 : index
    %c120 = arith.constant 120 : index
    %278 = vector.load %arg8[%c0_157, %c120] : memref<8x256xf32, #tpu.memory_space<vmem>>, vector<2x5xf32>
    tpu.vector_store %arg8[%c0_157, %c120], %277 {strides = array<i32>} : memref<8x256xf32, #tpu.memory_space<vmem>>, vector<2x5xf32>,
    %279 = vector.extract_strided_slice %276 {offsets = [0, 5], sizes = [2, 5], strides = [1, 1]} : vector<2x15xf32> to vector<2x5xf32>
    %c2_158 = arith.constant 2 : index
    %c120_159 = arith.constant 120 : index
    %280 = vector.load %arg8[%c2_158, %c120_159] : memref<8x256xf32, #tpu.memory_space<vmem>>, vector<2x5xf32>
    tpu.vector_store %arg8[%c2_158, %c120_159], %279 {strides = array<i32>} : memref<8x256xf32, #tpu.memory_space<vmem>>, vector<2x5xf32>,
    %281 = vector.extract_strided_slice %276 {offsets = [0, 10], sizes = [2, 5], strides = [1, 1]} : vector<2x15xf32> to vector<2x5xf32>
    %c4_160 = arith.constant 4 : index
    %c120_161 = arith.constant 120 : index
    %282 = vector.load %arg8[%c4_160, %c120_161] : memref<8x256xf32, #tpu.memory_space<vmem>>, vector<2x5xf32>
    tpu.vector_store %arg8[%c4_160, %c120_161], %281 {strides = array<i32>} : memref<8x256xf32, #tpu.memory_space<vmem>>, vector<2x5xf32>,
    %283 = vector.extract_strided_slice %194 {offsets = [0, 11, 0], sizes = [2, 1, 15], strides = [1, 1, 1]} : vector<2x14x15xf32> to vector<2x1x15xf32>
    %284 = vector.shape_cast %283 : vector<2x1x15xf32> to vector<2x15xf32>
    %285 = vector.extract_strided_slice %284 {offsets = [0, 0], sizes = [2, 5], strides = [1, 1]} : vector<2x15xf32> to vector<2x5xf32>
    %c0_162 = arith.constant 0 : index
    %c125 = arith.constant 125 : index
    %286 = vector.load %arg8[%c0_162, %c125] : memref<8x256xf32, #tpu.memory_space<vmem>>, vector<2x5xf32>
    tpu.vector_store %arg8[%c0_162, %c125], %285 {strides = array<i32>} : memref<8x256xf32, #tpu.memory_space<vmem>>, vector<2x5xf32>,
    %287 = vector.extract_strided_slice %284 {offsets = [0, 5], sizes = [2, 5], strides = [1, 1]} : vector<2x15xf32> to vector<2x5xf32>
    %c2_163 = arith.constant 2 : index
    %c125_164 = arith.constant 125 : index
    %288 = vector.load %arg8[%c2_163, %c125_164] : memref<8x256xf32, #tpu.memory_space<vmem>>, vector<2x5xf32>
    tpu.vector_store %arg8[%c2_163, %c125_164], %287 {strides = array<i32>} : memref<8x256xf32, #tpu.memory_space<vmem>>, vector<2x5xf32>,
    %289 = vector.extract_strided_slice %284 {offsets = [0, 10], sizes = [2, 5], strides = [1, 1]} : vector<2x15xf32> to vector<2x5xf32>
    %c4_165 = arith.constant 4 : index
    %c125_166 = arith.constant 125 : index
    %290 = vector.load %arg8[%c4_165, %c125_166] : memref<8x256xf32, #tpu.memory_space<vmem>>, vector<2x5xf32>
    tpu.vector_store %arg8[%c4_165, %c125_166], %289 {strides = array<i32>} : memref<8x256xf32, #tpu.memory_space<vmem>>, vector<2x5xf32>,
    %291 = vector.extract_strided_slice %194 {offsets = [0, 12, 0], sizes = [2, 1, 15], strides = [1, 1, 1]} : vector<2x14x15xf32> to vector<2x1x15xf32>
    %292 = vector.shape_cast %291 : vector<2x1x15xf32> to vector<2x15xf32>
    %293 = vector.extract_strided_slice %292 {offsets = [0, 0], sizes = [2, 5], strides = [1, 1]} : vector<2x15xf32> to vector<2x5xf32>
    %c0_167 = arith.constant 0 : index
    %c130 = arith.constant 130 : index
    %294 = vector.load %arg8[%c0_167, %c130] : memref<8x256xf32, #tpu.memory_space<vmem>>, vector<2x5xf32>
    tpu.vector_store %arg8[%c0_167, %c130], %293 {strides = array<i32>} : memref<8x256xf32, #tpu.memory_space<vmem>>, vector<2x5xf32>,
    %295 = vector.extract_strided_slice %292 {offsets = [0, 5], sizes = [2, 5], strides = [1, 1]} : vector<2x15xf32> to vector<2x5xf32>
    %c2_168 = arith.constant 2 : index
    %c130_169 = arith.constant 130 : index
    %296 = vector.load %arg8[%c2_168, %c130_169] : memref<8x256xf32, #tpu.memory_space<vmem>>, vector<2x5xf32>
    tpu.vector_store %arg8[%c2_168, %c130_169], %295 {strides = array<i32>} : memref<8x256xf32, #tpu.memory_space<vmem>>, vector<2x5xf32>,
    %297 = vector.extract_strided_slice %292 {offsets = [0, 10], sizes = [2, 5], strides = [1, 1]} : vector<2x15xf32> to vector<2x5xf32>
    %c4_170 = arith.constant 4 : index
    %c130_171 = arith.constant 130 : index
    %298 = vector.load %arg8[%c4_170, %c130_171] : memref<8x256xf32, #tpu.memory_space<vmem>>, vector<2x5xf32>
    tpu.vector_store %arg8[%c4_170, %c130_171], %297 {strides = array<i32>} : memref<8x256xf32, #tpu.memory_space<vmem>>, vector<2x5xf32>,
    %299 = vector.extract_strided_slice %194 {offsets = [0, 13, 0], sizes = [2, 1, 15], strides = [1, 1, 1]} : vector<2x14x15xf32> to vector<2x1x15xf32>
    %300 = vector.shape_cast %299 : vector<2x1x15xf32> to vector<2x15xf32>
    %301 = vector.extract_strided_slice %300 {offsets = [0, 0], sizes = [2, 5], strides = [1, 1]} : vector<2x15xf32> to vector<2x5xf32>
    %c0_172 = arith.constant 0 : index
    %c135 = arith.constant 135 : index
    %302 = vector.load %arg8[%c0_172, %c135] : memref<8x256xf32, #tpu.memory_space<vmem>>, vector<2x5xf32>
    tpu.vector_store %arg8[%c0_172, %c135], %301 {strides = array<i32>} : memref<8x256xf32, #tpu.memory_space<vmem>>, vector<2x5xf32>,
    %303 = vector.extract_strided_slice %300 {offsets = [0, 5], sizes = [2, 5], strides = [1, 1]} : vector<2x15xf32> to vector<2x5xf32>
    %c2_173 = arith.constant 2 : index
    %c135_174 = arith.constant 135 : index
    %304 = vector.load %arg8[%c2_173, %c135_174] : memref<8x256xf32, #tpu.memory_space<vmem>>, vector<2x5xf32>
    tpu.vector_store %arg8[%c2_173, %c135_174], %303 {strides = array<i32>} : memref<8x256xf32, #tpu.memory_space<vmem>>, vector<2x5xf32>,
    %305 = vector.extract_strided_slice %300 {offsets = [0, 10], sizes = [2, 5], strides = [1, 1]} : vector<2x15xf32> to vector<2x5xf32>
    %c4_175 = arith.constant 4 : index
    %c135_176 = arith.constant 135 : index
    %306 = vector.load %arg8[%c4_175, %c135_176] : memref<8x256xf32, #tpu.memory_space<vmem>>, vector<2x5xf32>
    tpu.vector_store %arg8[%c4_175, %c135_176], %305 {strides = array<i32>} : memref<8x256xf32, #tpu.memory_space<vmem>>, vector<2x5xf32>,
    %c0_177 = arith.constant 0 : index
    %c0_178 = arith.constant 0 : index
    %307 = vector.load %arg8[%c0_177, %c0_178] : memref<8x256xf32, #tpu.memory_space<vmem>>, vector<8x256xf32>
    %308 = arith.truncf %307 : vector<8x256xf32> to vector<8x256xbf16>
    %c0_179 = arith.constant 0 : index
    %c0_180 = arith.constant 0 : index
    %309 = vector.load %arg5[%c0_179, %c0_180] : memref<256x128xbf16, #tpu.memory_space<vmem>>, vector<256x128xbf16>
    %cst_181 = arith.constant dense<0.000000e+00> : vector<8x128xf32>
    %310 = tpu.matmul %308, %309, %cst_181 {dimension_numbers = #tpu.dot_dimension_numbers<[1], [0], [0], [1], [0, 0, 1, 1], [], []>} : vector<8x256xbf16>, vector<256x128xbf16>, vector<8x128xf32> -> vector<8x128xf32>
    %c0_182 = arith.constant 0 : index
    %c0_183 = arith.constant 0 : index
    %311 = vector.load %arg6[%c0_182, %c0_183] : memref<1x128xf32, #tpu.memory_space<vmem>>, vector<1x128xf32>
    %312 = vector.broadcast %311 : vector<1x128xf32> to vector<8x128xf32>
    %313 = arith.addf %310, %312 : vector<8x128xf32>
    %c0_184 = arith.constant 0 : index
    %c0_185 = arith.constant 0 : index
    %314 = vector.load %arg7[%c0_184, %c0_185] : memref<8x128xf32, #tpu.memory_space<vmem>>, vector<8x128xf32>
    tpu.vector_store %arg7[%c0_184, %c0_185], %313 {strides = array<i32>} : memref<8x128xf32, #tpu.memory_space<vmem>>, vector<8x128xf32>,
    return
  }
}

</mosaic_0001>

<bundles_post_ra>
// kernel: patch_embedding_forward.1
= control target key start
LH: loop header
LB: loop body
LE: loop exit
PB: predicated region body
PF: predicated region fallthrough
CT: control target
= control target key end

     0   :  { %12 = vsyncpa [#allocation4], 0  ;;  %s1859_s0 = inlined_call_operand.vmem [shape: f32[2,3], index: 0, kind: input, shape index: {}]   ;;  %s1860_s1 = inlined_call_operand.vmem [shape: f32[2], index: 1, kind: input, shape index: {}]   ;;  %s1861_s2 = inlined_call_operand.vmem [shape: f32[2], index: 2, kind: input, shape index: {}]   ;;  %s1862_s3 = inlined_call_operand.vmem [shape: f32[2], index: 3, kind: input, shape index: {}]   ;;  %s1863_s4 = inlined_call_operand.vmem [shape: f32[2,14,17], index: 4, kind: input, shape index: {}]   ;;  %s1864_s5 = inlined_call_operand.vmem [shape: bf16[256,128], index: 5, kind: input, shape index: {}]   ;;  %s1865_s6 = inlined_call_operand.vmem [shape: f32[1,128], index: 6, kind: input, shape index: {}]   ;;  %s1866_s7 = inlined_call_operand.vmem [shape: f32[8,128], index: 7, kind: output, shape index: {}]  }
   0x1   :  { %13 = vsyncpa [#allocation6], 0  ;;  %s31_s26 = sshll.u32 %s1860_s1, 4  ;;  %s32_s26 = int_to_ptr.vmem [resolvable:$true] %s31_s26 }
   0x2   :  { %14 = vsyncpa [#allocation9], 0  ;;  %s21_s29 = sshll.u32 %s1859_s0, 4  ;;  %s1220_s30 = scalar_lea.vmem %s32_s26, 16  ;;  %s22_s29 = int_to_ptr.vmem [resolvable:$true] %s21_s29 }
   0x3   :  { %p1221_p0 = scmp.ne.s32.totalorder %s32_s26, %s1220_s30  ;;  %p1225_p1 = scmp.lt.s32.totalorder %s32_s26, %s32_s26 }
   0x4   :  { %p1226_p2 = scmp.lt.s32.totalorder %s1220_s30, %s1220_s30 }
   0x6   :  { %p1227_p3 = por %p1226_p2, %p1225_p1 }
   0x8   :  { %p1228_p4 = pnand %p1227_p3, %p1221_p0 }
   0xa   :  { %1231 = shalt.err (!%p1228_p4)
}
   0xb   :  { %s1274_s8 = smov [#allocation5]   ;;  %s1232_s9 = scalar_lea.vmem %s22_s29, 32 }
   0xc   :  { %34 = dma.vmem_to_smem %s32_s26, 16, %s1274_s8, [#allocation6]  }
   0xd   :  { %p1233_p5 = scmp.ne.s32.totalorder %s22_s29, %s1232_s9  ;;  %p1237_p6 = scmp.lt.s32.totalorder %s22_s29, %s22_s29 }
   0xe   :  { %p1238_p7 = scmp.lt.s32.totalorder %s1232_s9, %s1232_s9 }
  0x10   :  { %p1239_p8 = por %p1238_p7, %p1237_p6 }
  0x12   :  { %p1240_p9 = pnand %p1239_p8, %p1233_p5 }
  0x14   :  { %1243 = shalt.err (!%p1240_p9)
}
  0x15   :  { %s1275_s1 = smov [#allocation3]   ;;  %s41_s11 = sshll.u32 %s1861_s2, 4  ;;  %s42_s11 = int_to_ptr.vmem [resolvable:$true] %s41_s11 }
  0x16   :  { %24 = dma.vmem_to_smem %s22_s29, 32, %s1275_s1, [#allocation4]  }
  0x17   :  { %s51_s14 = sshll.u32 %s1862_s3, 4  ;;  %s1244_s15 = scalar_lea.vmem %s42_s11, 16  ;;  %s52_s14 = int_to_ptr.vmem [resolvable:$true] %s51_s14 }
  0x18   :  { %p1245_p10 = scmp.ne.s32.totalorder %s42_s11, %s1244_s15  ;;  %p1249_p11 = scmp.lt.s32.totalorder %s42_s11, %s42_s11 }
  0x19   :  { %p1250_p12 = scmp.lt.s32.totalorder %s1244_s15, %s1244_s15 }
  0x1b   :  { %p1251_p13 = por %p1250_p12, %p1249_p11 }
  0x1d   :  { %p1252_p0 = pnand %p1251_p13, %p1245_p10 }
  0x1f   :  { %1255 = shalt.err (!%p1252_p0)
}
  0x20   :  { %s1276_s16 = smov [#allocation7]   ;;  %s1256_s17 = scalar_lea.vmem %s52_s14, 16 }
  0x21   :  { %44 = dma.vmem_to_smem %s42_s11, 16, %s1276_s16, [#allocation6]  }
  0x22   :  { %p1257_p1 = scmp.ne.s32.totalorder %s52_s14, %s1256_s17  ;;  %p1261_p2 = scmp.lt.s32.totalorder %s52_s14, %s52_s14 }
  0x23   :  { %p1262_p3 = scmp.lt.s32.totalorder %s1256_s17, %s1256_s17 }
  0x25   :  { %p1263_p4 = por %p1262_p3, %p1261_p2 }
  0x27   :  { %p1264_p5 = pnand %p1263_p4, %p1257_p1 }
  0x29   :  { %1267 = shalt.err (!%p1264_p5)
}
  0x2a   :  { %s1277_s2 = smov [#allocation8]  }
  0x2b   :  { %54 = dma.vmem_to_smem %s52_s14, 16, %s1277_s2, [#allocation9]  }
  0x2c   :  { %1268 = dma.done.wait [#allocation4], 32  }
  0x2d   :  { %1269 = vsyncadd [#allocation4], 4294967264 }
  0x2e   :  { %1270 = dma.done.wait [#allocation6], 32  }
  0x2f   :  { %1271 = vsyncadd [#allocation6], 4294967264 }
  0x30   :  { %1272 = dma.done.wait [#allocation9], 16  }
  0x31   :  { %1273 = vsyncadd [#allocation9], 4294967280 }
  0x32   :  { %73 = sfence }
  0x33   :  { %s1105_s3 = sld [smem:[#allocation3 + $0x1]]  ;;  %s1106_s18 = sld [smem:[#allocation3 + $0x2]]  ;;  %v1365_v0 = vld [vmem:[%s1863_s4 + $0x10] sm:$0xff]  ;;  %v1370_v1 = vld [vmem:[%s1863_s4] sm:$0xff]  ;;  %v1375_v2 = vld [vmem:[%s1863_s4 + $0x8] sm:$0x3f] }
  0x34   :  { %s1278_s25 = smov 127   ;;  %v1386_v9 = vld [vmem:[%s1863_s4 + $0x18] sm:$0x3f]  ;;  %s1279_s28 = smov 126   ;;  %vm147_vm0 = vcmask 119808   ;;  %vm145_vm1 = vcmask 121856  }
  0x35   :  { %s1108_s29 = sld [smem:[#allocation3 + $0x81]]  ;;  %s1109_s4 = sld [smem:[#allocation3 + $0x82]]  ;;  %vm234_vm2 = vcmask 1045509   ;;  %vm225_vm3 = vcmask 1043459   ;;  %vm218_vm4 = vcmask 1041409   ;;  %vm221_vm5 = vcmask 33792  }
  0x36   :  { %s81_s30 = sld [smem:[#allocation3]]  ;;  %s1110_s1 = sld [smem:[#allocation5 + $0x1]]  ;;  %vm239_vm6 = vcmask 37892   ;;  %vm230_vm7 = vcmask 35842   ;;  %vm252_vm8 = vcmask 76842   ;;  %vm246_vm9 = vcmask 74792  }
  0x37   :  { %s139_s8 = sld [smem:[#allocation5]]  ;;  %s1281_s19 = smov 5   ;;  %vm260_vm10 = vcmask 78892   ;;  %vm278_vm11 = vcmask 119892   ;;  %vm298_vm12 = vcmask 160892   ;;  %vm268_vm13 = vcmask 115792  }
  0x38   :  { %s1107_s9 = sld [smem:[#allocation3 + $0x80]]  ;;  %s1282_s20 = smov 15   ;;  %vm274_vm14 = vcmask 117842   ;;  %vm286_vm15 = vcmask 156792  }
  0x39   :  { %v88_v3 = vstv %s1105_s3  ;;  %v114_v6 = vstv %s1106_s18  ;;  %s194_s14 = sld [smem:[#allocation7]]  ;;  %s1280_s18 = smov 118  }
  0x3a   :  { %v91_v4 = vmul.f32 %v88_v3, %v1365_v0  ;;  %v89_v5 = vmul.f32 %v88_v3, %v1370_v1  ;;  %v115_v7 = vmul.f32 %v114_v6, %v1370_v1  ;;  %v90_v8 = vmul.f32 %v88_v3, %v1375_v2  ;;  %s201_s15 = sld [smem:[#allocation8]]  ;;  %s1283_s21 = smov 25  }
  0x3b   :  { %v92_v10 = vmul.f32 %v88_v3, %v1386_v9  ;;  %v116_v11 = vmul.f32 %v114_v6, %v1375_v2  ;;  %v118_v12 = vmul.f32 %v114_v6, %v1386_v9  ;;  %v117_v13 = vmul.f32 %v114_v6, %v1365_v0  ;;  %s1284_s22 = smov 123   ;;  %s1285_s23 = smov 35  }
  0x3c   :  { %101 = vrot.lane.b32.xlu1 %v91_v4, %s1278_s25  ;;  %97 = vrot.lane.b32.xlu0 %v89_v5, %s1278_s25  ;;  %v503_v14 = vstv %s1108_s29  ;;  %v529_v18 = vstv %s1109_s4  ;;  %s1286_s24 = smov 10   ;;  %s1288_s26 = smov 20  }
  0x3d   :  { %v504_v15 = vmul.f32 %v503_v14, %v1370_v1  ;;  %v505_v16 = vmul.f32 %v503_v14, %v1375_v2  ;;  %v506_v17 = vmul.f32 %v503_v14, %v1365_v0  ;;  %v530_v19 = vmul.f32 %v529_v18, %v1370_v1  ;;  %s1289_s27 = smov 55   ;;  %s1291_s29 = smov 65  }
  0x3e   :  { %v531_v20 = vmul.f32 %v529_v18, %v1375_v2  ;;  %v507_v21 = vmul.f32 %v503_v14, %v1386_v9  ;;  %v532_v22 = vmul.f32 %v529_v18, %v1365_v0  ;;  %v82_v23 = vstv %s81_s30  ;;  %s1292_s4 = smov 40   ;;  %s1293_s30 = smov 50  }
  0x3f   :  { %v83_v26 = vmul.f32 %v82_v23, %v1370_v1  ;;  %v84_v27 = vmul.f32 %v82_v23, %v1375_v2  ;;  %v86_v31 = vmul.f32 %v82_v23, %v1386_v9  ;;  %v85_v32 = vmul.f32 %v82_v23, %v1365_v0 }
  0x40   :  { %123 = vrot.lane.b32.xlu1 %v115_v7, %s1279_s28  ;;  %99 = vrot.lane.b32.xlu0 %v90_v8, %s1278_s25  ;;  %v140_v35 = vstv %s139_s8  ;;  %v533_v56 = vmul.f32 %v529_v18, %v1386_v9  ;;  %v497_v61 = vstv %s1107_s9  ;;  %s1294_s8 = smov 60  }
  0x41   :  { %v498_v63 = vmul.f32 %v497_v61, %v1370_v1  ;;  %v499_v3 = vmul.f32 %v497_v61, %v1375_v2  ;;  %v500_v7 = vmul.f32 %v497_v61, %v1365_v0  ;;  %v501_v1 = vmul.f32 %v497_v61, %v1386_v9 }
  0x44   :  { %103 = vrot.lane.b32.xlu1 %v92_v10, %s1278_s25  ;;  %125 = vrot.lane.b32.xlu0 %v116_v11, %s1279_s28 }
  0x48   :  { %129 = vrot.lane.b32.xlu1 %v118_v12, %s1279_s28  ;;  %127 = vrot.lane.b32.xlu0 %v117_v13, %s1279_s28  ;;  %v555_v12 = vstv %s1110_s1 }
  0x4c   :  { %512 = vrot.lane.b32.xlu1 %v504_v15, %s1278_s25 }
  0x50   :  { %514 = vrot.lane.b32.xlu1 %v505_v16, %s1278_s25 }
  0x54   :  { %516 = vrot.lane.b32.xlu1 %v506_v17, %s1278_s25 }
  0x58   :  { %538 = vrot.lane.b32.xlu1 %v530_v19, %s1279_s28 }
  0x5c   :  { %540 = vrot.lane.b32.xlu1 %v531_v20, %s1279_s28 }
  0x60   :  { %518 = vrot.lane.b32.xlu1 %v507_v21, %s1278_s25  ;;  %s1287_s25 = smov 45  }
  0x64   :  { %542 = vrot.lane.b32.xlu1 %v532_v22, %s1279_s28 }
  0xae   :  { %v102_v24 = vpop.permute.xlu1 %101  ;;  %v98_v25 = vpop.permute.xlu0 %97 }
  0xaf   :  { %v109_v30 = vadd.f32 %v98_v25, %v83_v26  ;;  %v111_v40 = vadd.f32 %v102_v24, %v85_v32 }
  0xb2   :  { %v124_v28 = vpop.permute.xlu1 %123  ;;  %v100_v29 = vpop.permute.xlu0 %99 }
  0xb3   :  { %v135_v33 = vadd.f32 %v124_v28, %v109_v30  ;;  %v110_v34 = vadd.f32 %v100_v29, %v84_v27 }
  0xb5   :  { %v1416_v41 = vadd.f32 %v140_v35, %v135_v33 }
  0xb6   :  { %v104_v36 = vpop.permute.xlu1 %103  ;;  %v126_v37 = vpop.permute.xlu0 %125 }
  0xb7   :  { %v112_v38 = vadd.f32 %v104_v36, %v86_v31  ;;  %v136_v39 = vadd.f32 %v126_v37, %v110_v34  ;;  %v146_v48 = vsel %vm145_vm1, %v1416_v41, 0.0 }
  0xb9   :  { %v1418_v42 = vadd.f32 %v140_v35, %v136_v39 }
  0xba   :  { %v130_v43 = vpop.permute.xlu1 %129  ;;  %v128_v44 = vpop.permute.xlu0 %127 }
  0xbb   :  { %v148_v45 = vsel %vm147_vm0, %v1418_v42, 0.0  ;;  %v138_v46 = vadd.f32 %v130_v43, %v112_v38  ;;  %v137_v47 = vadd.f32 %v128_v44, %v111_v40 }
  0xbc   :  { %v149_v51 = vadd.f32 %v148_v45, %v146_v48 }
  0xbd   :  { %v144_v49 = vadd.f32 %v140_v35, %v138_v46  ;;  %v143_v50 = vadd.f32 %v140_v35, %v137_v47 }
  0xbe   :  { %v513_v57 = vpop.permute.xlu1 %512 }
  0xbf   :  { %v150_v52 = vsel %vm145_vm1, %v143_v50, 0.0  ;;  %v152_v54 = vsel %vm147_vm0, %v144_v49, 0.0  ;;  %v524_v5 = vadd.f32 %v513_v57, %v498_v63 }
  0xc0   :  { %v151_v53 = vadd.f32 %v150_v52, %v149_v51 }
  0xc2   :  { %v153_v55 = vadd.f32 %v152_v54, %v151_v53  ;;  %v515_v58 = vpop.permute.xlu1 %514 }
  0xc3   :  { %v525_v6 = vadd.f32 %v515_v58, %v499_v3 }
  0xc4   :  { %154 = vadd.xlane.f32.xlu0 %v153_v55 }
  0xc6   :  { %v517_v59 = vpop.permute.xlu1 %516 }
  0xc7   :  { %v526_v8 = vadd.f32 %v517_v59, %v500_v7 }
  0xca   :  { %v539_v60 = vpop.permute.xlu1 %538 }
  0xcb   :  { %v550_v10 = vadd.f32 %v539_v60, %v524_v5  ;;  %v202_v5 = vstv %s201_s15  ;;  %s1296_s15 = smov 75  }
  0xcd   :  { %v1431_v14 = vadd.f32 %v555_v12, %v550_v10 }
  0xce   :  { %v541_v62 = vpop.permute.xlu1 %540 }
  0xcf   :  { %v551_v11 = vadd.f32 %v541_v62, %v525_v6  ;;  %v560_v2 = vsel %vm145_vm1, %v1431_v14, 0.0 }
  0xd1   :  { %v1433_v15 = vadd.f32 %v555_v12, %v551_v11 }
  0xd2   :  { %v519_v4 = vpop.permute.xlu1 %518 }
  0xd3   :  { %v561_v17 = vsel %vm147_vm0, %v1433_v15, 0.0  ;;  %v527_v20 = vadd.f32 %v519_v4, %v501_v1 }
  0xd4   :  { %v562_v21 = vadd.f32 %v561_v17, %v560_v2 }
  0xd6   :  { %v543_v13 = vpop.permute.xlu1 %542 }
  0xd7   :  { %v552_v16 = vadd.f32 %v543_v13, %v526_v8 }
  0xd9   :  { %v1440_v18 = vadd.f32 %v555_v12, %v552_v16 }
  0xda   :  { %544 = vrot.lane.b32.xlu0 %v533_v56, %s1279_s28  ;;  %s1290_s28 = smov 30  }
  0xdb   :  { %v563_v23 = vsel %vm145_vm1, %v1440_v18, 0.0 }
  0xdc   :  { %v564_v9 = vadd.f32 %v563_v23, %v562_v21 }
 0x151   :  { %v155_v0 = vpop.xlane.xlu0 %154 }
 0x152   :  { %v156_v19 = vrot.slane %v155_v0, 4 }
 0x154   :  { %v157_v22 = vadd.f32 %v156_v19, %v155_v0 }
 0x155   :  { %v545_v24 = vpop.permute.xlu0 %544 }
 0x156   :  { %v158_v25 = vrot.slane %v157_v22, 2  ;;  %v553_v26 = vadd.f32 %v545_v24, %v527_v20 }
 0x158   :  { %v159_v27 = vadd.f32 %v158_v25, %v157_v22  ;;  %v1444_v28 = vadd.f32 %v555_v12, %v553_v26 }
 0x15a   :  { %v160_v29 = vrot.slane %v159_v27, 1  ;;  %v565_v30 = vsel %vm147_vm0, %v1444_v28, 0.0 }
 0x15b   :  { %v566_v31 = vadd.f32 %v565_v30, %v564_v9 }
 0x15c   :  { %v161_v32 = vadd.f32 %v160_v29, %v159_v27 }
 0x15d   :  { %567 = vadd.xlane.f32.xlu0 %v566_v31 }
 0x15e   :  { %1152 = vpush %v161_v32 }
 0x18f   :  { %s1153_s0 = spop %1152 }
 0x190   :  { %s163_s10 = smul.f32 0.0023809525, %s1153_s0 }
 0x192   :  { %v164_v33 = vstv %s163_s10  ;;  %s1111_s10 = sld [smem:[#allocation7 + $0x1]] }
 0x193   :  { %v165_v34 = vsub.f32 %v1416_v41, %v164_v33  ;;  %v1450_v35 = vsub.f32 %v1418_v42, %v164_v33  ;;  %v167_v36 = vsub.f32 %v143_v50, %v164_v33  ;;  %v1452_v37 = vsub.f32 %v144_v49, %v164_v33 }
 0x195   :  { %v169_v38 = vmul.f32 %v165_v34, %v165_v34  ;;  %v170_v39 = vmul.f32 %v1450_v35, %v1450_v35  ;;  %v171_v40 = vmul.f32 %v167_v36, %v167_v36  ;;  %v172_v43 = vmul.f32 %v1452_v37, %v1452_v37 }
 0x197   :  { %v173_v44 = vsel %vm145_vm1, %v169_v38, 0.0  ;;  %v174_v45 = vsel %vm147_vm0, %v170_v39, 0.0  ;;  %v176_v41 = vsel %vm145_vm1, %v171_v40, 0.0  ;;  %v178_v47 = vsel %vm147_vm0, %v172_v43, 0.0 }
 0x198   :  { %v175_v46 = vadd.f32 %v174_v45, %v173_v44 }
 0x19a   :  { %v177_v42 = vadd.f32 %v176_v41, %v175_v46 }
 0x19c   :  { %v179_v48 = vadd.f32 %v178_v47, %v177_v42 }
 0x19e   :  { %180 = vadd.xlane.f32.xlu1 %v179_v48 }
 0x1ea   :  { %v568_v56 = vpop.xlane.xlu0 %567 }
 0x1eb   :  { %v569_v57 = vrot.slane %v568_v56, 4 }
 0x1ed   :  { %v570_v58 = vadd.f32 %v569_v57, %v568_v56 }
 0x1ef   :  { %v571_v59 = vrot.slane %v570_v58, 2 }
 0x1f1   :  { %v572_v61 = vadd.f32 %v571_v59, %v570_v58 }
 0x1f3   :  { %v573_v62 = vrot.slane %v572_v61, 1 }
 0x1f5   :  { %v574_v3 = vadd.f32 %v573_v62, %v572_v61 }
 0x22b   :  { %v181_v49 = vpop.xlane.xlu1 %180 }
 0x22c   :  { %v182_v50 = vrot.slane %v181_v49, 4 }
 0x22e   :  { %v183_v51 = vadd.f32 %v182_v50, %v181_v49 }
 0x230   :  { %v184_v52 = vrot.slane %v183_v51, 2 }
 0x232   :  { %v185_v53 = vadd.f32 %v184_v52, %v183_v51 }
 0x234   :  { %v186_v54 = vrot.slane %v185_v53, 1 }
 0x236   :  { %v187_v55 = vadd.f32 %v186_v54, %v185_v53 }
 0x238   :  { %1154 = vpush %v187_v55 }
 0x269   :  { %s1155_s11 = spop %1154 }
 0x26a   :  { %s189_s12 = smul.f32 0.0023809525, %s1155_s11  ;;  %s1112_s11 = sld [smem:[#allocation8 + $0x1]] }
 0x26c   :  { %s190_s13 = sadd.f32 1e-05, %s189_s12 }
 0x26e   :  { %v191_v60 = vstv %s190_s13 }
 0x26f   :  { %1216 = vrsqrt.f32 %v191_v60 }
 0x279   :  { %v1217_v63 = vpop.eup %1216 }
 0x27a   :  { %1156 = vpush %v1217_v63 }
 0x27b   :  { %1158 = vpush %v574_v3 }
 0x2ab   :  { %s1157_s16 = spop %1156 }
 0x2ac   :  { %s195_s17 = smul.f32 %s1157_s16, %s194_s14  ;;  %s1159_s2 = spop %1158 }
 0x2ad   :  { %s576_s3 = smul.f32 0.0023809525, %s1159_s2  ;;  %s1295_s14 = smov 70  }
 0x2ae   :  { %v196_v4 = vstv %s195_s17  ;;  %s1297_s16 = smov 80   ;;  %s1298_s17 = smov 85  }
 0x2af   :  { %v197_v6 = vmul.f32 %v196_v4, %v165_v34  ;;  %v199_v7 = vmul.f32 %v196_v4, %v167_v36  ;;  %v577_v8 = vstv %s576_s3  ;;  %v198_v40 = vmul.f32 %v196_v4, %v1450_v35  ;;  %s1299_s2 = smov 90   ;;  %s1300_s3 = smov 95  }
 0x2b0   :  { %v1463_v12 = vsub.f32 %v1431_v14, %v577_v8  ;;  %v1466_v13 = vsub.f32 %v1433_v15, %v577_v8  ;;  %v1469_v16 = vsub.f32 %v1440_v18, %v577_v8  ;;  %v1472_v1 = vsub.f32 %v1444_v28, %v577_v8 }
 0x2b1   :  { %v203_v10 = vadd.f32 %v202_v5, %v197_v6  ;;  %v205_v11 = vadd.f32 %v202_v5, %v199_v7  ;;  %v200_v43 = vmul.f32 %v196_v4, %v1452_v37  ;;  %v204_v35 = vadd.f32 %v202_v5, %v198_v40 }
 0x2b2   :  { %v582_v0 = vmul.f32 %v1463_v12, %v1463_v12  ;;  %v583_v19 = vmul.f32 %v1466_v13, %v1466_v13  ;;  %v584_v14 = vmul.f32 %v1469_v16, %v1469_v16  ;;  %v585_v18 = vmul.f32 %v1472_v1, %v1472_v1 }
 0x2b3   :  { %v207_v2 = vmul.f32 0.2, %v203_v10  ;;  %v209_v17 = vmul.f32 0.2, %v205_v11  ;;  %v206_v37 = vadd.f32 %v202_v5, %v200_v43  ;;  %v208_v51 = vmul.f32 0.2, %v204_v35 }
 0x2b4   :  { %v586_v21 = vsel %vm145_vm1, %v582_v0, 0.0  ;;  %v587_v22 = vsel %vm147_vm0, %v583_v19, 0.0  ;;  %v589_v26 = vsel %vm145_vm1, %v584_v14, 0.0  ;;  %v591_v30 = vsel %vm147_vm0, %v585_v18, 0.0 }
 0x2b5   :  { %v1480_v20 = vmax.f32 %v203_v10, %v207_v2  ;;  %v1482_v15 = vmax.f32 %v205_v11, %v209_v17  ;;  %v588_v25 = vadd.f32 %v587_v22, %v586_v21  ;;  %v210_v52 = vmul.f32 0.2, %v206_v37 }
 0x2b6   :  { %v1556_v55 = vmax.f32 %v204_v35, %v208_v51  ;;  %vm292_vm0 = vcmask 158842   ;;  %vm310_vm1 = vcmask 199842  }
 0x2b7   :  { %v1489_v23 = vrot.slane %v1480_v20, 4  ;;  %v1492_v24 = vrot.slane %v1482_v15, 3  ;;  %v590_v27 = vadd.f32 %v589_v26, %v588_v25  ;;  %v248_v28 = vrot.slane %v1480_v20, 7 }
 0x2b8   :  { %v249_v29 = vrot.slane %v1482_v15, 6  ;;  %v1503_v33 = vrot.slane %v1480_v20, 2  ;;  %v1506_v34 = vrot.slane %v1482_v15, 1  ;;  %v1513_v38 = vrot.slane %v1480_v20, 5 }
 0x2b9   :  { %v235_v9 = vsel %vm234_vm2, %v1492_v24, %v1489_v23  ;;  %v592_v31 = vadd.f32 %v591_v30, %v590_v27  ;;  %v1516_v39 = vrot.slane %v1482_v15, 4  ;;  %v241_v44 = vrot.slane %v1480_v20, 1 }
 0x2ba   :  { %236 = vrot.lane.b32.xlu0 %v235_v9, %s1280_s18  ;;  %v294_v32 = vsel %vm234_vm2, %v249_v29, %v248_v28  ;;  %v306_v36 = vsel %vm225_vm3, %v1506_v34, %v1503_v33  ;;  %v1526_v46 = vrot.slane %v1480_v20, 6  ;;  %v1529_v41 = vrot.slane %v1482_v15, 5  ;;  %s1301_s18 = smov 100  }
 0x2bb   :  { %593 = vadd.xlane.f32.xlu1 %v592_v31  ;;  %v318_v45 = vsel %vm218_vm4, %v1516_v39, %v1513_v38  ;;  %v1532_v42 = vrot.slane %v1482_v15, 7  ;;  %v1536_v47 = vsel %vm225_vm3, %v249_v29, %v248_v28  ;;  %v330_v48 = vsel %vm234_vm2, %v1482_v15, %v241_v44 }
 0x2bc   :  { %v1546_v50 = vsel %vm234_vm2, %v1529_v41, %v1526_v46  ;;  %v226_v53 = vsel %vm225_vm3, %v1529_v41, %v1526_v46  ;;  %v342_v54 = vsel %vm225_vm3, %v1492_v24, %v1489_v23  ;;  %v1558_v56 = vmax.f32 %v206_v37, %v210_v52 }
 0x2bd   :  { %v219_v49 = vsel %vm218_vm4, %v1532_v42, %v1480_v20  ;;  %v242_v57 = vsel %vm218_vm4, %v1482_v15, %v241_v44  ;;  %v354_v58 = vsel %vm218_vm4, %v249_v29, %v248_v28  ;;  %v280_v59 = vrot.slane %v1480_v20, 3 }
 0x2be   :  { %295 = vrot.lane.b32.xlu0 %v294_v32, %s1281_s19  ;;  %222 = vst.msk [vmem:[#allocation2] sm:$0x3] %vm221_vm5, %v219_v49  ;;  %v281_v60 = vrot.slane %v1482_v15, 2  ;;  %v256_v61 = vsel %vm234_vm2, %v1516_v39, %v1513_v38  ;;  %v381_v63 = vrot.slane %v1556_v55, 6  ;;  %v382_v3 = vrot.slane %v1558_v56, 5 }
 0x2bf   :  { %v264_v4 = vsel %vm218_vm4, %v1506_v34, %v1503_v33  ;;  %v1582_v6 = vrot.slane %v1556_v55, 1  ;;  %v270_v7 = vsel %vm225_vm3, %v1532_v42, %v1480_v20  ;;  %v412_v10 = vrot.slane %v1556_v55, 5 }
 0x2c0   :  { %v366_v62 = vsel %vm234_vm2, %v281_v60, %v280_v59  ;;  %v383_v5 = vsel %vm225_vm3, %v382_v3, %v381_v63  ;;  %v413_v11 = vrot.slane %v1558_v56, 4  ;;  %v282_v2 = vsel %vm218_vm4, %v281_v60, %v280_v59 }
 0x2c1   :  { %v398_v8 = vsel %vm218_vm4, %v1558_v56, %v1582_v6  ;;  %v374_v0 = vrot.slane %v1558_v56, 7  ;;  %v288_v19 = vsel %vm225_vm3, %v1482_v15, %v241_v44  ;;  %v440_v18 = vrot.slane %v1556_v55, 3 }
 0x2c2   :  { %307 = vrot.lane.b32.xlu0 %v306_v36, %s1282_s20  ;;  %v414_v17 = vsel %vm234_vm2, %v413_v11, %v412_v10  ;;  %v441_v21 = vrot.slane %v1558_v56, 2  ;;  %v300_v22 = vsel %vm218_vm4, %v1492_v24, %v1489_v23  ;;  %v404_v26 = vrot.slane %v1556_v55, 7 }
 0x2c3   :  { %v428_v14 = vsel %vm225_vm3, %v374_v0, %v1556_v55  ;;  %v405_v15 = vrot.slane %v1558_v56, 6  ;;  %v312_v9 = vsel %vm234_vm2, %v1532_v42, %v1480_v20  ;;  %v420_v28 = vrot.slane %v1556_v55, 2 }
 0x2c4   :  { %v442_v25 = vsel %vm218_vm4, %v441_v21, %v440_v18  ;;  %v421_v23 = vrot.slane %v1558_v56, 1  ;;  %v324_v24 = vsel %vm225_vm3, %v281_v60, %v280_v59  ;;  %v336_v30 = vsel %vm218_vm4, %v1529_v41, %v1526_v46 }
 0x2c5   :  { %v454_v27 = vsel %vm234_vm2, %v405_v15, %v404_v26  ;;  %v478_v20 = vsel %vm218_vm4, %v413_v11, %v412_v10  ;;  %v348_v31 = vsel %vm234_vm2, %v1506_v34, %v1503_v33  ;;  %v490_v32 = vsel %vm234_vm2, %v1558_v56, %v1582_v6 }
 0x2c6   :  { %319 = vrot.lane.b32.xlu0 %v318_v45, %s1283_s21  ;;  %v466_v29 = vsel %vm225_vm3, %v421_v23, %v420_v28  ;;  %v360_v36 = vsel %vm225_vm3, %v1516_v39, %v1513_v38  ;;  %v375_v40 = vsel %vm218_vm4, %v374_v0, %v1556_v55  ;;  %v389_v43 = vrot.slane %v1556_v55, 4 }
 0x2c7   :  { %v390_v44 = vrot.slane %v1558_v56, 3  ;;  %v406_v34 = vsel %vm225_vm3, %v405_v15, %v404_v26  ;;  %v422_v45 = vsel %vm218_vm4, %v421_v23, %v420_v28  ;;  %v434_v38 = vsel %vm234_vm2, %v382_v3, %v381_v63 }
 0x2c8   :  { %v448_v39 = vsel %vm225_vm3, %v1558_v56, %v1582_v6  ;;  %v472_v41 = vsel %vm234_vm2, %v374_v0, %v1556_v55  ;;  %v484_v42 = vsel %vm225_vm3, %v441_v21, %v440_v18  ;;  %vm304_vm5 = vcmask 197792  }
 0x2c9   :  { %v391_v33 = vsel %vm234_vm2, %v390_v44, %v389_v43  ;;  %v460_v46 = vsel %vm218_vm4, %v390_v44, %v389_v43 }
 0x2ca   :  { %331 = vrot.lane.b32.xlu0 %v330_v48, %s1282_s20 }
 0x2cc   :  { %227 = vrot.lane.b32.xlu1 %v226_v53, %s1284_s22 }
 0x2ce   :  { %343 = vrot.lane.b32.xlu0 %v342_v54, %s1283_s21 }
 0x2d0   :  { %243 = vrot.lane.b32.xlu1 %v242_v57, %s1281_s19 }
 0x2d2   :  { %355 = vrot.lane.b32.xlu0 %v354_v58, %s1285_s23 }
 0x2d4   :  { %257 = vrot.lane.b32.xlu1 %v256_v61, %s1284_s22 }
 0x2d6   :  { %367 = vrot.lane.b32.xlu0 %v366_v62, %s1283_s21 }
 0x2d8   :  { %265 = vrot.lane.b32.xlu1 %v264_v4, %s1286_s24 }
 0x2da   :  { %384 = vrot.lane.b32.xlu0 %v383_v5, %s1285_s23 }
 0x2dc   :  { %271 = vrot.lane.b32.xlu1 %v270_v7, %s1281_s19  ;;  %s1302_s19 = smov 105  }
 0x2de   :  { %399 = vrot.lane.b32.xlu0 %v398_v8, %s1287_s25 }
 0x2e0   :  { %283 = vrot.lane.b32.xlu1 %v282_v2, %s1282_s20 }
 0x2e2   :  { %415 = vrot.lane.b32.xlu0 %v414_v17, %s1285_s23 }
 0x2e4   :  { %289 = vrot.lane.b32.xlu1 %v288_v19, %s1286_s24 }
 0x2e6   :  { %429 = vrot.lane.b32.xlu0 %v428_v14, %s1287_s25 }
 0x2e8   :  { %301 = vrot.lane.b32.xlu1 %v300_v22, %s1288_s26 }
 0x2ea   :  { %443 = vrot.lane.b32.xlu0 %v442_v25, %s1289_s27 }
 0x2ec   :  { %313 = vrot.lane.b32.xlu1 %v312_v9, %s1286_s24 }
 0x2ee   :  { %455 = vrot.lane.b32.xlu0 %v454_v27, %s1287_s25 }
 0x2f0   :  { %325 = vrot.lane.b32.xlu1 %v324_v24, %s1288_s26 }
 0x2f2   :  { %467 = vrot.lane.b32.xlu0 %v466_v29, %s1289_s27 }
 0x2f4   :  { %337 = vrot.lane.b32.xlu1 %v336_v30, %s1290_s28 }
 0x2f6   :  { %479 = vrot.lane.b32.xlu0 %v478_v20, %s1291_s29 }
 0x2f8   :  { %349 = vrot.lane.b32.xlu1 %v348_v31, %s1288_s26  ;;  %s1304_s26 = smov 110  }
 0x2fa   :  { %491 = vrot.lane.b32.xlu0 %v490_v32, %s1289_s27 }
 0x2fc   :  { %361 = vrot.lane.b32.xlu1 %v360_v36, %s1290_s28 }
 0x300   :  { %376 = vrot.lane.b32.xlu1 %v375_v40, %s1292_s4  ;;  %v1657_v40 = vstv %s1112_s11  ;;  %s1307_s11 = smov 120  }
 0x304   :  { %392 = vrot.lane.b32.xlu1 %v391_v33, %s1290_s28 }
 0x308   :  { %407 = vrot.lane.b32.xlu1 %v406_v34, %s1292_s4 }
 0x30c   :  { %423 = vrot.lane.b32.xlu1 %v422_v45, %s1293_s30 }
 0x310   :  { %435 = vrot.lane.b32.xlu1 %v434_v38, %s1292_s4  ;;  %s1309_s4 = smov 7  }
 0x314   :  { %449 = vrot.lane.b32.xlu1 %v448_v39, %s1293_s30 }
 0x318   :  { %461 = vrot.lane.b32.xlu1 %v460_v46, %s1294_s8 }
 0x31c   :  { %473 = vrot.lane.b32.xlu1 %v472_v41, %s1293_s30  ;;  %s1305_s30 = smov 125  }
 0x320   :  { %485 = vrot.lane.b32.xlu1 %v484_v42, %s1294_s8 }
 0x32c   :  { %v237_v35 = vpop.permute.xlu0 %236 }
 0x32d   :  { %240 = vst.msk [vmem:[#allocation2] sm:$0x30] %vm239_vm6, %v237_v35  ;;  %vm322_vm6 = vcmask 238792  }
 0x330   :  { %v296_v37 = vpop.permute.xlu0 %295 }
 0x334   :  { %v308_v49 = vpop.permute.xlu0 %307 }
 0x338   :  { %v320_v55 = vpop.permute.xlu0 %319 }
 0x33c   :  { %v332_v61 = vpop.permute.xlu0 %331 }
 0x348   :  { %v594_v48 = vpop.xlane.xlu1 %593 }
 0x349   :  { %v595_v51 = vrot.slane %v594_v48, 4 }
 0x34b   :  { %v596_v52 = vadd.f32 %v595_v51, %v594_v48 }
 0x34c   :  { %v228_v53 = vpop.permute.xlu1 %227 }
 0x34d   :  { %v597_v54 = vrot.slane %v596_v52, 2  ;;  %231 = vst.msk [vmem:[#allocation2] sm:$0xc] %vm230_vm7, %v228_v53  ;;  %vm316_vm7 = vcmask 201892  }
 0x34e   :  { %253 = vst.msk [vmem:[#allocation2] sm:$0xc] %vm252_vm8, %v1536_v47  ;;  %v344_v47 = vpop.permute.xlu0 %343  ;;  %vm334_vm8 = vcmask 242892  }
 0x34f   :  { %v598_v56 = vadd.f32 %v597_v54, %v596_v52 }
 0x350   :  { %v244_v57 = vpop.permute.xlu1 %243 }
 0x351   :  { %247 = vst.msk [vmem:[#allocation2] sm:$0x3] %vm246_vm9, %v244_v57  ;;  %v599_v58 = vrot.slane %v598_v56, 1  ;;  %vm328_vm9 = vcmask 240842  }
 0x352   :  { %v356_v4 = vpop.permute.xlu0 %355 }
 0x353   :  { %v600_v59 = vadd.f32 %v599_v58, %v598_v56 }
 0x354   :  { %v258_v60 = vpop.permute.xlu1 %257 }
 0x355   :  { %261 = vst.msk [vmem:[#allocation2] sm:$0x30] %vm260_vm10, %v258_v60  ;;  %vm346_vm10 = vcmask 281842  }
 0x356   :  { %1160 = vpush %v600_v59  ;;  %v368_v6 = vpop.permute.xlu0 %367 }
 0x357   :  { %279 = vst.msk [vmem:[#allocation2] sm:$0x30] %vm278_vm11, %v1546_v50  ;;  %vm340_vm11 = vcmask 279792  }
 0x358   :  { %299 = vst.msk [vmem:[#allocation2] sm:$0x30] %vm298_vm12, %v296_v37  ;;  %v266_v62 = vpop.permute.xlu1 %265  ;;  %vm358_vm12 = vcmask 320792  }
 0x359   :  { %269 = vst.msk [vmem:[#allocation2] sm:$0x3] %vm268_vm13, %v266_v62  ;;  %vm352_vm13 = vcmask 283892  }
 0x35a   :  { %v385_v8 = vpop.permute.xlu0 %384 }
 0x35c   :  { %v272_v63 = vpop.permute.xlu1 %271 }
 0x35d   :  { %275 = vst.msk [vmem:[#allocation2] sm:$0xc] %vm274_vm14, %v272_v63  ;;  %vm370_vm14 = vcmask 324892  }
 0x35e   :  { %v400_v11 = vpop.permute.xlu0 %399 }
 0x360   :  { %v284_v3 = vpop.permute.xlu1 %283 }
 0x361   :  { %287 = vst.msk [vmem:[#allocation2] sm:$0x3] %vm286_vm15, %v284_v3  ;;  %vm364_vm15 = vcmask 322842  }
 0x362   :  { %v416_v0 = vpop.permute.xlu0 %415 }
 0x364   :  { %v290_v5 = vpop.permute.xlu1 %289 }
 0x365   :  { %293 = vst.msk [vmem:[#allocation2] sm:$0xc] %vm292_vm0, %v290_v5  ;;  %vm387_vm0 = vcmask 363842  }
 0x366   :  { %311 = vst.msk [vmem:[#allocation2] sm:$0xc] %vm310_vm1, %v308_v49  ;;  %vm379_vm1 = vcmask 361792   ;;  %v430_v14 = vpop.permute.xlu0 %429 }
 0x368   :  { %v302_v50 = vpop.permute.xlu1 %301 }
 0x369   :  { %305 = vst.msk [vmem:[#allocation2] sm:$0x3] %vm304_vm5, %v302_v50  ;;  %vm402_vm5 = vcmask 402792  }
 0x36a   :  { %323 = vst.msk [vmem:[#allocation2] sm:$0x3] %vm322_vm6, %v320_v55  ;;  %vm395_vm6 = vcmask 365892   ;;  %v444_v22 = vpop.permute.xlu0 %443 }
 0x36c   :  { %v314_v7 = vpop.permute.xlu1 %313 }
 0x36d   :  { %317 = vst.msk [vmem:[#allocation2] sm:$0x30] %vm316_vm7, %v314_v7  ;;  %vm418_vm7 = vcmask 406892  }
 0x36e   :  { %335 = vst.msk [vmem:[#allocation2] sm:$0x30] %vm334_vm8, %v332_v61  ;;  %vm410_vm8 = vcmask 404842   ;;  %v456_v26 = vpop.permute.xlu0 %455 }
 0x370   :  { %v326_v10 = vpop.permute.xlu1 %325 }
 0x371   :  { %329 = vst.msk [vmem:[#allocation2] sm:$0xc] %vm328_vm9, %v326_v10  ;;  %vm432_vm9 = vcmask 445842  }
 0x372   :  { %347 = vst.msk [vmem:[#allocation2] sm:$0xc] %vm346_vm10, %v344_v47  ;;  %vm426_vm10 = vcmask 443792   ;;  %v468_v28 = vpop.permute.xlu0 %467 }
 0x374   :  { %v338_v2 = vpop.permute.xlu1 %337 }
 0x375   :  { %341 = vst.msk [vmem:[#allocation2] sm:$0x3] %vm340_vm11, %v338_v2  ;;  %vm446_vm11 = vcmask 484792  }
 0x376   :  { %359 = vst.msk [vmem:[#allocation2] sm:$0x3] %vm358_vm12, %v356_v4  ;;  %vm438_vm12 = vcmask 447892   ;;  %v480_v29 = vpop.permute.xlu0 %479 }
 0x378   :  { %v350_v17 = vpop.permute.xlu1 %349 }
 0x379   :  { %353 = vst.msk [vmem:[#allocation2] sm:$0x30] %vm352_vm13, %v350_v17  ;;  %vm458_vm13 = vcmask 488892  }
 0x37a   :  { %371 = vst.msk [vmem:[#allocation2] sm:$0x30] %vm370_vm14, %v368_v6  ;;  %vm452_vm14 = vcmask 486842   ;;  %v492_v31 = vpop.permute.xlu0 %491 }
 0x37c   :  { %v362_v19 = vpop.permute.xlu1 %361 }
 0x37d   :  { %365 = vst.msk [vmem:[#allocation2] sm:$0xc] %vm364_vm15, %v362_v19  ;;  %vm470_vm15 = vcmask 527842  }
 0x37e   :  { %388 = vst.msk [vmem:[#allocation2] sm:$0xc] %vm387_vm0, %v385_v8  ;;  %vm464_vm0 = vcmask 525792  }
 0x380   :  { %v377_v18 = vpop.permute.xlu1 %376 }
 0x381   :  { %380 = vst.msk [vmem:[#allocation2] sm:$0x3] %vm379_vm1, %v377_v18  ;;  %vm482_vm1 = vcmask 566792  }
 0x382   :  { %403 = vst.msk [vmem:[#allocation2] sm:$0x3] %vm402_vm5, %v400_v11  ;;  %vm476_vm5 = vcmask 529892  }
 0x384   :  { %v393_v21 = vpop.permute.xlu1 %392 }
 0x385   :  { %396 = vst.msk [vmem:[#allocation2] sm:$0x30] %vm395_vm6, %v393_v21  ;;  %vm494_vm6 = vcmask 570892  }
 0x386   :  { %419 = vst.msk [vmem:[#allocation2] sm:$0x30] %vm418_vm7, %v416_v0  ;;  %vm488_vm7 = vcmask 568842  }
 0x387   :  { %s1161_s9 = spop %1160 }
 0x388   :  { %s602_s1 = smul.f32 0.0023809525, %s1161_s9  ;;  %v408_v25 = vpop.permute.xlu1 %407 }
 0x389   :  { %411 = vst.msk [vmem:[#allocation2] sm:$0xc] %vm410_vm8, %v408_v25  ;;  %vm75_vm8 = vcmask 1047648  }
 0x38a   :  { %s603_s0 = sadd.f32 1e-05, %s602_s1  ;;  %433 = vst.msk [vmem:[#allocation2] sm:$0xc] %vm432_vm9, %v430_v14  ;;  %vm643_vm9 = vcmask 609842  }
 0x38c   :  { %v604_v15 = vstv %s603_s0  ;;  %v424_v9 = vpop.permute.xlu1 %423 }
 0x38d   :  { %1218 = vrsqrt.f32 %v604_v15  ;;  %427 = vst.msk [vmem:[#allocation2] sm:$0x3] %vm426_vm10, %v424_v9  ;;  %v1303_v9 = vmov 0.0   ;;  %vm651_vm10 = vcmask 611892  }
 0x38e   :  { %447 = vst.msk [vmem:[#allocation2] sm:$0x3] %vm446_vm11, %v444_v22  ;;  %vm658_vm11 = vcmask 648792  }
 0x38f   :  { %76 = vst.msk [vmem:[#allocation2 + $0x8] sm:$0xff] %vm75_vm8, %v1303_v9  ;;  %vm738_vm8 = vcmask 812792  }
 0x390   :  { %v436_v27 = vpop.permute.xlu1 %435 }
 0x391   :  { %439 = vst.msk [vmem:[#allocation2] sm:$0x30] %vm438_vm12, %v436_v27  ;;  %vm674_vm12 = vcmask 652892  }
 0x392   :  { %459 = vst.msk [vmem:[#allocation2] sm:$0x30] %vm458_vm13, %v456_v26  ;;  %vm688_vm13 = vcmask 691842  }
 0x394   :  { %v450_v23 = vpop.permute.xlu1 %449 }
 0x395   :  { %453 = vst.msk [vmem:[#allocation2] sm:$0xc] %vm452_vm14, %v450_v23  ;;  %vm694_vm14 = vcmask 693892  }
 0x396   :  { %471 = vst.msk [vmem:[#allocation2] sm:$0xc] %vm470_vm15, %v468_v28  ;;  %vm702_vm15 = vcmask 730792  }
 0x397   :  { %v1219_v24 = vpop.eup %1218 }
 0x398   :  { %1162 = vpush %v1219_v24  ;;  %v462_v30 = vpop.permute.xlu1 %461 }
 0x399   :  { %465 = vst.msk [vmem:[#allocation2] sm:$0x3] %vm464_vm0, %v462_v30  ;;  %v1200_v30 = vld [vmem:[%s1864_s5 + $0x40] sm:$0xff]   ;;  %vm708_vm0 = vcmask 732842  }
 0x39a   :  { %483 = vst.msk [vmem:[#allocation2] sm:$0x3] %vm482_vm1, %v480_v29  ;;  %1130 = vmatprep.subr.bf16.mxu0 %v1200_v30  ;;  %vm714_vm1 = vcmask 734892  }
 0x39c   :  { %v474_v20 = vpop.permute.xlu1 %473 }
 0x39d   :  { %477 = vst.msk [vmem:[#allocation2] sm:$0x30] %vm476_vm5, %v474_v20  ;;  %vm720_vm5 = vcmask 771792  }
 0x39e   :  { %495 = vst.msk [vmem:[#allocation2] sm:$0x30] %vm494_vm6, %v492_v31  ;;  %vm726_vm6 = vcmask 773842  }
 0x3a0   :  { %v486_v32 = vpop.permute.xlu1 %485 }
 0x3a1   :  { %489 = vst.msk [vmem:[#allocation2] sm:$0xc] %vm488_vm7, %v486_v32  ;;  %vm732_vm7 = vcmask 775892  }
 0x3c9   :  { %s1163_s12 = spop %1162 }
 0x3ca   :  { %s608_s13 = smul.f32 %s1163_s12, %s1111_s10  ;;  %s1306_s10 = smov 115  }
 0x3cc   :  { %v609_v36 = vstv %s608_s13 }
 0x3cd   :  { %v610_v43 = vmul.f32 %v609_v36, %v1463_v12  ;;  %v612_v44 = vmul.f32 %v609_v36, %v1469_v16  ;;  %v611_v8 = vmul.f32 %v609_v36, %v1466_v13  ;;  %v613_v10 = vmul.f32 %v609_v36, %v1472_v1 }
 0x3cf   :  { %v616_v33 = vadd.f32 %v1657_v40, %v610_v43  ;;  %v618_v34 = vadd.f32 %v1657_v40, %v612_v44  ;;  %v617_v17 = vadd.f32 %v1657_v40, %v611_v8  ;;  %v619_v0 = vadd.f32 %v1657_v40, %v613_v10  ;;  %v1201_v44 = vld [vmem:[%s1864_s5] sm:$0xff]  }
 0x3d0   :  { %1131 = vmatpush3.bf16.msra.mxu0 %v1201_v44 }
 0x3d1   :  { %v620_v45 = vmul.f32 0.2, %v616_v33  ;;  %v622_v38 = vmul.f32 0.2, %v618_v34  ;;  %v621_v1 = vmul.f32 0.2, %v617_v17 }
 0x3d2   :  { %v623_v14 = vmul.f32 0.2, %v619_v0 }
 0x3d3   :  { %v624_v39 = vmax.f32 %v616_v33, %v620_v45  ;;  %v626_v46 = vmax.f32 %v618_v34, %v622_v38  ;;  %v1711_v22 = vmax.f32 %v617_v17, %v621_v1  ;;  %v1202_v33 = vld [vmem:[%s1864_s5 + $0x48] sm:$0xff]  }
 0x3d4   :  { %v1713_v25 = vmax.f32 %v619_v0, %v623_v14  ;;  %1132 = vmatprep.subr.bf16.mxu0 %v1202_v33 }
 0x3d5   :  { %v1663_v41 = vrot.slane %v624_v39, 6  ;;  %v1665_v42 = vrot.slane %v626_v46, 5  ;;  %v630_v35 = vrot.slane %v626_v46, 7  ;;  %v653_v37 = vrot.slane %v624_v39, 1 }
 0x3d6   :  { %v645_v48 = vrot.slane %v624_v39, 4  ;;  %v646_v49 = vrot.slane %v626_v46, 3  ;;  %v1672_v51 = vrot.slane %v624_v39, 5  ;;  %v1674_v52 = vrot.slane %v626_v46, 4 }
 0x3d7   :  { %v639_v12 = vsel %vm225_vm3, %v1665_v42, %v1663_v41  ;;  %v631_v16 = vsel %vm218_vm4, %v630_v35, %v624_v39  ;;  %v654_v53 = vsel %vm218_vm4, %v626_v46, %v653_v37  ;;  %v660_v55 = vrot.slane %v624_v39, 7 }
 0x3d8   :  { %640 = vrot.lane.b32.xlu0 %v639_v12, %s1291_s29  ;;  %632 = vrot.lane.b32.xlu1 %v631_v16, %s1295_s14  ;;  %v647_v54 = vsel %vm234_vm2, %v646_v49, %v645_v48  ;;  %v661_v56 = vrot.slane %v626_v46, 6  ;;  %v670_v57 = vsel %vm234_vm2, %v1674_v52, %v1672_v51  ;;  %v676_v59 = vrot.slane %v624_v39, 2  ;;  %v1205_v12 = vld [vmem:[%s1864_s5 + $0x10] sm:$0xff]   ;;  %v1206_v16 = vld [vmem:[%s1864_s5 + $0x58] sm:$0xff]  }
 0x3d9   :  { %v677_v60 = vrot.slane %v626_v46, 1  ;;  %v684_v61 = vsel %vm225_vm3, %v630_v35, %v624_v39  ;;  %v696_v47 = vrot.slane %v624_v39, 3  ;;  %v697_v63 = vrot.slane %v626_v46, 2 }
 0x3da   :  { %v662_v58 = vsel %vm225_vm3, %v661_v56, %v660_v55  ;;  %v690_v4 = vsel %vm234_vm2, %v1665_v42, %v1663_v41  ;;  %v710_v5 = vsel %vm234_vm2, %v661_v56, %v660_v55  ;;  %v704_v6 = vsel %vm225_vm3, %v626_v46, %v653_v37 }
 0x3db   :  { %v678_v62 = vsel %vm218_vm4, %v677_v60, %v676_v59  ;;  %v698_v3 = vsel %vm218_vm4, %v697_v63, %v696_v47  ;;  %v722_v50 = vsel %vm225_vm3, %v677_v60, %v676_v59  ;;  %v716_v7 = vsel %vm218_vm4, %v646_v49, %v645_v48 }
 0x3dc   :  { %655 = vrot.lane.b32.xlu0 %v654_v53, %s1296_s15  ;;  %648 = vrot.lane.b32.xlu1 %v647_v54, %s1294_s8  ;;  %v734_v11 = vsel %vm218_vm4, %v1674_v52, %v1672_v51  ;;  %v728_v2 = vsel %vm234_vm2, %v630_v35, %v624_v39  ;;  %v746_v19 = vsel %vm234_vm2, %v626_v46, %v653_v37  ;;  %v797_v27 = vrot.slane %v1711_v22, 6  ;;  %v1207_v53 = vld [vmem:[%s1864_s5 + $0x18] sm:$0xff]   ;;  %v1208_v54 = vld [vmem:[%s1864_s5 + $0x60] sm:$0xff]  }
 0x3dd   :  { %v740_v13 = vsel %vm225_vm3, %v697_v63, %v696_v47  ;;  %v758_v18 = vsel %vm225_vm3, %v646_v49, %v645_v48  ;;  %v752_v21 = vsel %vm218_vm4, %v1665_v42, %v1663_v41  ;;  %v770_v26 = vsel %vm218_vm4, %v661_v56, %v660_v55  ;;  %v1203_v41 = vld [vmem:[%s1864_s5 + $0x8] sm:$0xff]   ;;  %v1204_v42 = vld [vmem:[%s1864_s5 + $0x50] sm:$0xff]  }
 0x3de   :  { %v764_v15 = vsel %vm234_vm2, %v677_v60, %v676_v59  ;;  %v782_v28 = vsel %vm234_vm2, %v697_v63, %v696_v47  ;;  %v776_v23 = vsel %vm225_vm3, %v1674_v52, %v1672_v51  ;;  %v798_v24 = vrot.slane %v1713_v25, 5  ;;  %1133 = vmatpush3.bf16.msra.mxu0 %v1203_v41  ;;  %v1209_v59 = vld [vmem:[%s1864_s5 + $0x20] sm:$0xff]   ;;  %v1210_v60 = vld [vmem:[%s1864_s5 + $0x68] sm:$0xff]   ;;  %v1212_v63 = vld [vmem:[%s1864_s5 + $0x70] sm:$0xff]  }
 0x3df   :  { %v1725_v29 = vrot.slane %v1713_v25, 7  ;;  %v856_v20 = vrot.slane %v1711_v22, 3  ;;  %v857_v31 = vrot.slane %v1713_v25, 2  ;;  %v805_v40 = vrot.slane %v1711_v22, 4  ;;  %1134 = vmatprep.subr.bf16.mxu0 %v1204_v42  ;;  %v1211_v47 = vld [vmem:[%s1864_s5 + $0x28] sm:$0xff]  }
 0x3e0   :  { %671 = vrot.lane.b32.xlu0 %v670_v57, %s1291_s29  ;;  %663 = vrot.lane.b32.xlu1 %v662_v58, %s1295_s14  ;;  %v799_v32 = vsel %vm225_vm3, %v798_v24, %v797_v27  ;;  %v806_v43 = vrot.slane %v1713_v25, 3  ;;  %v820_v34 = vrot.slane %v1711_v22, 7  ;;  %v821_v39 = vrot.slane %v1713_v25, 6 }
 0x3e1   :  { %v791_v36 = vsel %vm218_vm4, %v1725_v29, %v1711_v22  ;;  %v858_v45 = vsel %vm218_vm4, %v857_v31, %v856_v20  ;;  %v1761_v46 = vrot.slane %v1711_v22, 1  ;;  %v828_v51 = vrot.slane %v1711_v22, 5 }
 0x3e2   :  { %v807_v38 = vsel %vm234_vm2, %v806_v43, %v805_v40  ;;  %v874_v35 = vsel %vm234_vm2, %v821_v39, %v820_v34  ;;  %1135 = vmatpush3.bf16.msra.mxu0 %v1205_v12  ;;  %v822_v48 = vsel %vm225_vm3, %v821_v39, %v820_v34  ;;  %v829_v52 = vrot.slane %v1713_v25, 4 }
 0x3e3   :  { %v866_v37 = vsel %vm225_vm3, %v1713_v25, %v1761_v46  ;;  %1136 = vmatprep.subr.bf16.mxu0 %v1206_v16  ;;  %v814_v49 = vsel %vm218_vm4, %v1713_v25, %v1761_v46  ;;  %v882_v55 = vsel %vm218_vm4, %v806_v43, %v805_v40  ;;  %v836_v57 = vrot.slane %v1711_v22, 2 }
 0x3e4   :  { %685 = vrot.lane.b32.xlu0 %v684_v61, %s1296_s15  ;;  %679 = vrot.lane.b32.xlu1 %v678_v62, %s1297_s16  ;;  %v830_v56 = vsel %vm234_vm2, %v829_v52, %v828_v51  ;;  %v837_v58 = vrot.slane %v1713_v25, 1  ;;  %v894_v61 = vsel %vm234_vm2, %v1725_v29, %v1711_v22  ;;  %v850_v8 = vsel %vm234_vm2, %v798_v24, %v797_v27 }
 0x3e5   :  { %v912_v10 = vsel %vm234_vm2, %v1713_v25, %v1761_v46  ;;  %vm666_vm2 = vcmask 650842  }
 0x3e6   :  { %1137 = vmatpush3.bf16.msra.mxu0 %v1207_v53  ;;  %v888_v62 = vsel %vm225_vm3, %v837_v58, %v836_v57 }
 0x3e7   :  { %1138 = vmatprep.subr.bf16.mxu0 %v1208_v54 }
 0x3e8   :  { %699 = vrot.lane.b32.xlu0 %v698_v3, %s1298_s17  ;;  %691 = vrot.lane.b32.xlu1 %v690_v4, %s1295_s14  ;;  %v1213_v3 = vld [vmem:[%s1864_s5 + $0x30] sm:$0xff]   ;;  %v844_v4 = vsel %vm225_vm3, %v1725_v29, %v1711_v22 }
 0x3ea   :  { %1139 = vmatpush3.bf16.msra.mxu0 %v1209_v59 }
 0x3eb   :  { %1140 = vmatprep.subr.bf16.mxu0 %v1210_v60 }
 0x3ec   :  { %711 = vrot.lane.b32.xlu0 %v710_v5, %s1296_s15  ;;  %705 = vrot.lane.b32.xlu1 %v704_v6, %s1297_s16  ;;  %v838_v5 = vsel %vm218_vm4, %v837_v58, %v836_v57  ;;  %v1214_v6 = vld [vmem:[%s1864_s5 + $0x78] sm:$0xff]   ;;  %v1113_v57 = vld [vmem:[%s1865_s6] ss:$0 sm:$0xff] }
 0x3ee   :  { %1141 = vmatpush3.bf16.msra.mxu0 %v1211_v47 }
 0x3ef   :  { %1142 = vmatprep.subr.bf16.mxu0 %v1212_v63 }
 0x3f0   :  { %723 = vrot.lane.b32.xlu0 %v722_v50, %s1298_s17  ;;  %717 = vrot.lane.b32.xlu1 %v716_v7, %s1299_s2  ;;  %v1215_v50 = vld [vmem:[%s1864_s5 + $0x38] sm:$0xff]   ;;  %v900_v7 = vsel %vm218_vm4, %v829_v52, %v828_v51  ;;  %vm635_vm4 = vcmask 607792  }
 0x3f2   :  { %1143 = vmatpush3.bf16.msra.mxu0 %v1213_v3 }
 0x3f3   :  { %1144 = vmatprep.subr.bf16.mxu0 %v1214_v6 }
 0x3f4   :  { %735 = vrot.lane.b32.xlu0 %v734_v11, %s1300_s3  ;;  %729 = vrot.lane.b32.xlu1 %v728_v2, %s1297_s16  ;;  %s1308_s16 = smov 2   ;;  %v906_v11 = vsel %vm225_vm3, %v857_v31, %v856_v20  ;;  %vm682_vm3 = vcmask 689792  }
 0x3f6   :  { %1145 = vmatpush3.bf16.msra.mxu0 %v1215_v50 }
 0x3f8   :  { %747 = vrot.lane.b32.xlu0 %v746_v19, %s1298_s17  ;;  %741 = vrot.lane.b32.xlu1 %v740_v13, %s1299_s2 }
 0x3fc   :  { %759 = vrot.lane.b32.xlu0 %v758_v18, %s1300_s3  ;;  %753 = vrot.lane.b32.xlu1 %v752_v21, %s1301_s18 }
 0x400   :  { %771 = vrot.lane.b32.xlu0 %v770_v26, %s1302_s19  ;;  %765 = vrot.lane.b32.xlu1 %v764_v15, %s1299_s2 }
 0x404   :  { %783 = vrot.lane.b32.xlu0 %v782_v28, %s1300_s3  ;;  %777 = vrot.lane.b32.xlu1 %v776_v23, %s1301_s18 }
 0x408   :  { %800 = vrot.lane.b32.xlu0 %v799_v32, %s1302_s19  ;;  %792 = vrot.lane.b32.xlu1 %v791_v36, %s1304_s26 }
 0x40c   :  { %859 = vrot.lane.b32.xlu0 %v858_v45, %s1305_s30  ;;  %808 = vrot.lane.b32.xlu1 %v807_v38, %s1301_s18 }
 0x410   :  { %875 = vrot.lane.b32.xlu0 %v874_v35, %s1306_s10  ;;  %867 = vrot.lane.b32.xlu1 %v866_v37, %s1307_s11 }
 0x414   :  { %823 = vrot.lane.b32.xlu0 %v822_v48, %s1304_s26  ;;  %815 = vrot.lane.b32.xlu1 %v814_v49, %s1306_s10 }
 0x418   :  { %883 = vrot.lane.b32.xlu0 %v882_v55, %s1308_s16  ;;  %831 = vrot.lane.b32.xlu1 %v830_v56, %s1302_s19 }
 0x41c   :  { %895 = vrot.lane.b32.xlu0 %v894_v61, %s1307_s11  ;;  %889 = vrot.lane.b32.xlu1 %v888_v62, %s1305_s30 }
 0x420   :  { %845 = vrot.lane.b32.xlu0 %v844_v4, %s1306_s10  ;;  %839 = vrot.lane.b32.xlu1 %v838_v5, %s1307_s11 }
 0x424   :  { %901 = vrot.lane.b32.xlu0 %v900_v7, %s1309_s4  ;;  %851 = vrot.lane.b32.xlu1 %v850_v8, %s1304_s26 }
 0x428   :  { %913 = vrot.lane.b32.xlu0 %v912_v10, %s1305_s30  ;;  %907 = vrot.lane.b32.xlu1 %v906_v11, %s1308_s16 }
 0x44a   :  { %v633_v2 = vpop.permute.xlu1 %632  ;;  %v641_v17 = vpop.permute.xlu0 %640 }
 0x44b   :  { %636 = vst.msk [vmem:[#allocation2] sm:$0x3] %vm635_vm4, %v633_v2  ;;  %vm744_vm4 = vcmask 814842  }
 0x44c   :  { %644 = vst.msk [vmem:[#allocation2] sm:$0xc] %vm643_vm9, %v641_v17  ;;  %vm750_vm9 = vcmask 816892  }
 0x44e   :  { %v649_v0 = vpop.permute.xlu1 %648  ;;  %v656_v19 = vpop.permute.xlu0 %655 }
 0x44f   :  { %652 = vst.msk [vmem:[#allocation2] sm:$0x30] %vm651_vm10, %v649_v0  ;;  %vm756_vm10 = vcmask 853792  }
 0x450   :  { %659 = vst.msk [vmem:[#allocation2] sm:$0x3] %vm658_vm11, %v656_v19  ;;  %vm762_vm11 = vcmask 855842  }
 0x452   :  { %v664_v13 = vpop.permute.xlu1 %663  ;;  %v672_v1 = vpop.permute.xlu0 %671 }
 0x453   :  { %667 = vst.msk [vmem:[#allocation2] sm:$0xc] %vm666_vm2, %v664_v13  ;;  %vm768_vm2 = vcmask 857892  }
 0x454   :  { %675 = vst.msk [vmem:[#allocation2] sm:$0x30] %vm674_vm12, %v672_v1  ;;  %vm774_vm12 = vcmask 894792  }
 0x456   :  { %v680_v14 = vpop.permute.xlu1 %679  ;;  %v686_v18 = vpop.permute.xlu0 %685 }
 0x457   :  { %683 = vst.msk [vmem:[#allocation2] sm:$0x3] %vm682_vm3, %v680_v14  ;;  %vm780_vm3 = vcmask 896842  }
 0x458   :  { %689 = vst.msk [vmem:[#allocation2] sm:$0xc] %vm688_vm13, %v686_v18  ;;  %vm786_vm13 = vcmask 898892  }
 0x45a   :  { %v692_v21 = vpop.permute.xlu1 %691  ;;  %v700_v22 = vpop.permute.xlu0 %699 }
 0x45b   :  { %695 = vst.msk [vmem:[#allocation2] sm:$0x30] %vm694_vm14, %v692_v21  ;;  %vm795_vm14 = vcmask 935792  }
 0x45c   :  { %703 = vst.msk [vmem:[#allocation2] sm:$0x3] %vm702_vm15, %v700_v22  ;;  %vm803_vm15 = vcmask 937842  }
 0x45e   :  { %v706_v25 = vpop.permute.xlu1 %705  ;;  %v712_v26 = vpop.permute.xlu0 %711 }
 0x45f   :  { %709 = vst.msk [vmem:[#allocation2] sm:$0xc] %vm708_vm0, %v706_v25  ;;  %vm811_vm0 = vcmask 939892  }
 0x460   :  { %715 = vst.msk [vmem:[#allocation2] sm:$0x30] %vm714_vm1, %v712_v26  ;;  %vm864_vm1 = vcmask 9216  }
 0x462   :  { %v718_v15 = vpop.permute.xlu1 %717  ;;  %v724_v9 = vpop.permute.xlu0 %723 }
 0x463   :  { %721 = vst.msk [vmem:[#allocation2] sm:$0x3] %vm720_vm5, %v718_v15  ;;  %vm872_vm5 = vcmask 11266  }
 0x464   :  { %727 = vst.msk [vmem:[#allocation2] sm:$0xc] %vm726_vm6, %v724_v9  ;;  %vm880_vm6 = vcmask 13316  }
 0x466   :  { %v730_v27 = vpop.permute.xlu1 %729  ;;  %v736_v28 = vpop.permute.xlu0 %735 }
 0x467   :  { %733 = vst.msk [vmem:[#allocation2] sm:$0x30] %vm732_vm7, %v730_v27  ;;  %vm818_vm7 = vcmask 976792  }
 0x468   :  { %739 = vst.msk [vmem:[#allocation2] sm:$0x3] %vm738_vm8, %v736_v28  ;;  %vm826_vm8 = vcmask 978842  }
 0x46a   :  { %v742_v23 = vpop.permute.xlu1 %741  ;;  %v748_v24 = vpop.permute.xlu0 %747 }
 0x46b   :  { %745 = vst.msk [vmem:[#allocation2] sm:$0xc] %vm744_vm4, %v742_v23  ;;  %vm834_vm4 = vcmask 980892  }
 0x46c   :  { %751 = vst.msk [vmem:[#allocation2] sm:$0x30] %vm750_vm9, %v748_v24  ;;  %vm886_vm9 = vcmask 50192  }
 0x46e   :  { %v754_v29 = vpop.permute.xlu1 %753  ;;  %v760_v30 = vpop.permute.xlu0 %759 }
 0x46f   :  { %757 = vst.msk [vmem:[#allocation2] sm:$0x3] %vm756_vm10, %v754_v29  ;;  %vm892_vm10 = vcmask 52242  }
 0x470   :  { %763 = vst.msk [vmem:[#allocation2] sm:$0xc] %vm762_vm11, %v760_v30  ;;  %vm898_vm11 = vcmask 54292  }
 0x472   :  { %v766_v20 = vpop.permute.xlu1 %765  ;;  %v772_v31 = vpop.permute.xlu0 %771 }
 0x473   :  { %769 = vst.msk [vmem:[#allocation2] sm:$0x30] %vm768_vm2, %v766_v20  ;;  %vm842_vm2 = vcmask 1017792  }
 0x474   :  { %775 = vst.msk [vmem:[#allocation2] sm:$0x3] %vm774_vm12, %v772_v31  ;;  %vm848_vm12 = vcmask 1019842  }
 0x476   :  { %v778_v32 = vpop.permute.xlu1 %777  ;;  %v784_v36 = vpop.permute.xlu0 %783 }
 0x477   :  { %781 = vst.msk [vmem:[#allocation2] sm:$0xc] %vm780_vm3, %v778_v32  ;;  %vm862_vm3 = vcmask 1042408  }
 0x478   :  { %787 = vst.msk [vmem:[#allocation2] sm:$0x30] %vm786_vm13, %v784_v36  ;;  %vm870_vm13 = vcmask 1044458  }
 0x47a   :  { %v793_v40 = vpop.permute.xlu1 %792  ;;  %v801_v43 = vpop.permute.xlu0 %800 }
 0x47b   :  { %796 = vst.msk [vmem:[#allocation2] sm:$0x3] %vm795_vm14, %v793_v40  ;;  %vm854_vm14 = vcmask 1021892  }
 0x47c   :  { %804 = vst.msk [vmem:[#allocation2] sm:$0xc] %vm803_vm15, %v801_v43  ;;  %vm904_vm15 = vcmask 91192  }
 0x47e   :  { %v809_v44 = vpop.permute.xlu1 %808  ;;  %v860_v33 = vpop.permute.xlu0 %859 }
 0x47f   :  { %812 = vst.msk [vmem:[#allocation2] sm:$0x30] %vm811_vm0, %v809_v44  ;;  %vm878_vm0 = vcmask 1046508  }
 0x480   :  { %865 = vst.msk [vmem:[#allocation2 + $0x8] sm:$0x3] %vm864_vm1, %v860_v33  ;;  %vm910_vm1 = vcmask 93242  }
 0x482   :  { %v868_v34 = vpop.permute.xlu1 %867  ;;  %v876_v45 = vpop.permute.xlu0 %875 }
 0x483   :  { %873 = vst.msk [vmem:[#allocation2 + $0x8] sm:$0xc] %vm872_vm5, %v868_v34  ;;  %vm916_vm5 = vcmask 95292  }
 0x484   :  { %881 = vst.msk [vmem:[#allocation2 + $0x8] sm:$0x30] %vm880_vm6, %v876_v45 }
 0x486   :  { %v816_v38 = vpop.permute.xlu1 %815  ;;  %v824_v39 = vpop.permute.xlu0 %823 }
 0x487   :  { %819 = vst.msk [vmem:[#allocation2] sm:$0x3] %vm818_vm7, %v816_v38 }
 0x488   :  { %827 = vst.msk [vmem:[#allocation2] sm:$0xc] %vm826_vm8, %v824_v39 }
 0x48a   :  { %v832_v46 = vpop.permute.xlu1 %831  ;;  %v884_v41 = vpop.permute.xlu0 %883 }
 0x48b   :  { %835 = vst.msk [vmem:[#allocation2] sm:$0x30] %vm834_vm4, %v832_v46 }
 0x48c   :  { %887 = vst.msk [vmem:[#allocation2 + $0x8] sm:$0x3] %vm886_vm9, %v884_v41 }
 0x48e   :  { %v890_v42 = vpop.permute.xlu1 %889  ;;  %v896_v35 = vpop.permute.xlu0 %895 }
 0x48f   :  { %893 = vst.msk [vmem:[#allocation2 + $0x8] sm:$0xc] %vm892_vm10, %v890_v42 }
 0x490   :  { %899 = vst.msk [vmem:[#allocation2 + $0x8] sm:$0x30] %vm898_vm11, %v896_v35 }
 0x492   :  { %v840_v37 = vpop.permute.xlu1 %839  ;;  %v846_v12 = vpop.permute.xlu0 %845 }
 0x493   :  { %843 = vst.msk [vmem:[#allocation2] sm:$0x3] %vm842_vm2, %v840_v37 }
 0x494   :  { %849 = vst.msk [vmem:[#allocation2] sm:$0xc] %vm848_vm12, %v846_v12 }
 0x495   :  { %863 = vst.msk [vmem:[#allocation2] sm:$0x3] %vm862_vm3, %v860_v33 }
 0x496   :  { %871 = vst.msk [vmem:[#allocation2] sm:$0xc] %vm870_vm13, %v868_v34  ;;  %v852_v16 = vpop.permute.xlu1 %851  ;;  %v902_v48 = vpop.permute.xlu0 %901 }
 0x497   :  { %855 = vst.msk [vmem:[#allocation2] sm:$0x30] %vm854_vm14, %v852_v16 }
 0x498   :  { %905 = vst.msk [vmem:[#allocation2 + $0x8] sm:$0x3] %vm904_vm15, %v902_v48 }
 0x499   :  { %879 = vst.msk [vmem:[#allocation2] sm:$0x30] %vm878_vm0, %v876_v45 }
 0x49a   :  { %v908_v49 = vpop.permute.xlu1 %907  ;;  %v914_v51 = vpop.permute.xlu0 %913 }
 0x49b   :  { %911 = vst.msk [vmem:[#allocation2 + $0x8] sm:$0xc] %vm910_vm1, %v908_v49 }
 0x49c   :  { %917 = vst.msk [vmem:[#allocation2 + $0x8] sm:$0x30] %vm916_vm5, %v914_v51 }
 0x4a0   :  { %v918_v52 = vld [vmem:[#allocation2] sm:$0xff] }
 0x4a1   :  { %v920_v55 = vpack.c.bf16 %v918_v52, %v918_v52 }
 0x4a3   :  { %v919_v53 = vld [vmem:[#allocation2 + $0x8] sm:$0xff] }
 0x4a4   :  { %v921_v54 = vpack.c.bf16 %v919_v53, %v919_v53 }
 0x4a6   :  { %1089 = vmatprep.mubr.bf16.mxu0 %v921_v54 }
 0x4a7   :  { %1090 = vmatmul.mubr.bf16.vlgmr.msra.gmra.mrb[0].mxu0 %v920_v55 }
 0x57a   :  { %v1146_v56 = vpop.f32.mrb[0].mxu0 }
 0x57b   :  { %v1147_v58 = vpop.f32.mrb[1].mxu0 }
 0x57c   :  { %v1148_v59 = vadd.f32 %v1147_v58, %v1146_v56  ;;  %v1149_v60 = vpop.f32.mrb[2].mxu0 }
 0x57d   :  { %v1150_v61 = vpop.f32.mrb[3].mxu0 }
 0x57e   :  { %v1092_v62 = vadd.f32 %v1148_v59, %v1113_v57 }
 0x580   :  { %1097 = vst [vmem:[%s1866_s7] sm:$0xff] %v1092_v62 }
 0x581   :  { %1102 = vsyncpa [#allocation4], 1 }
 0x582   :  { %1103 = vsyncpa [#allocation6], 1 }
 0x583   :  { %1104 = vsyncpa [#allocation9], 1 }

</bundles_post_ra>
